<compile_context>
chip_gen: v7x
topology: tpu7x:2x2x1
jax: 0.10.0
libtpu: 0.0.40
codegen_flags: <defaults>
</compile_context>

<pallas_src>
import jax
import jax.numpy as jnp
from jax import lax
from jax.experimental import pallas as pl
from jax.experimental.pallas import tpu as pltpu

# ----------------------------- configuration -------------------------------
B = 2              # batch
CIN = 3            # input channels (resnet expects 3)
H = W = 16         # spatial
C1 = 16            # conv stem output channels ("backbone feature width")
Z_DIM = 32         # z_dim
NUM_CLASSES = 4    # args.num_classes
K = CIN * 9        # im2col patch length (27)
HW = H * W
BHW = B * HW
HEAD_OUT = Z_DIM + NUM_CLASSES   # packed (z | logits) width = 36
OUT_PAD = 128                    # lane-dense packed output width

_TAPS = tuple((dy, dx) for dy in range(3) for dx in range(3))

_FLOPS = (2 * BHW * K * C1 + 2 * B * BHW * C1
          + 2 * B * C1 * Z_DIM + 2 * B * Z_DIM * NUM_CLASSES)
_BYTES = 4 * (B * (H + 2) * (W + 2) * CIN + K * C1 + C1 + C1 * Z_DIM + Z_DIM
              + Z_DIM * NUM_CLASSES + NUM_CLASSES + B * OUT_PAD)


# ------------------------------ Pallas kernel ------------------------------
def modelbase_kernel(x_ref, wc_ref, bc_ref, wf_ref, bf_ref, wcls_ref, bcls_ref,
                     out_ref):
    # x_ref   : (B, H+2, W+2, CIN)   f32  zero-padded NHWC input (VMEM)
    # wc_ref  : (9*CIN, C1)          f32  conv weight, row = (dy*3+dx)*CIN + c
    # bc_ref  : (1, C1)              f32  conv bias
    # wf_ref  : (C1, Z_DIM)          f32  backbone fc weight, pre-scaled 1/HW
    # bf_ref  : (1, Z_DIM)           f32  backbone fc bias
    # wcls_ref: (Z_DIM, NUM_CLASSES) f32  classifier weight
    # bcls_ref: (1, NUM_CLASSES)     f32  classifier bias
    # out_ref : (B, OUT_PAD)         f32  packed slab: z lanes [0:Z_DIM),
    #                                     logits lanes [Z_DIM:HEAD_OUT)

    # 3x3 "SAME" conv: in-kernel im2col via 9 statically shifted window
    # loads, each a (BHW, CIN) x (CIN, C1) MXU matmul, accumulated in f32.
    conv = None
    for t, (dy, dx) in enumerate(_TAPS):
        v = x_ref[:, dy:dy + H, dx:dx + W, :].reshape(BHW, CIN)      # (BHW, 3)
        w_t = wc_ref[t * CIN:(t + 1) * CIN, :]                       # (3, C1)
        p = jnp.dot(v, w_t, preferred_element_type=jnp.float32)
        conv = p if conv is None else conv + p                       # (BHW, C1)

    act = jnp.maximum(conv + bc_ref[...], 0.0)                       # ReLU (VPU)

    # Global average pool as a tiny 0/1 pooling matmul (per-batch row sums;
    # the 1/HW scale is folded into wf).  No reshape / concatenate copies.
    lane = lax.broadcasted_iota(jnp.int32, (B, BHW), 1)
    row = lax.broadcasted_iota(jnp.int32, (B, BHW), 0)
    lo = row * HW
    pool = ((lane >= lo) & (lane < lo + HW)).astype(jnp.float32)     # (B, BHW)
    feat = jnp.dot(pool, act, preferred_element_type=jnp.float32)    # (B, C1)

    # Backbone fc then classifier, sequentially, so logits come from the same
    # z that is returned (matches cls(net(x)) exactly).
    z = jnp.dot(feat, wf_ref[...], preferred_element_type=jnp.float32) + bf_ref[...]
    logits = (jnp.dot(z, wcls_ref[...], preferred_element_type=jnp.float32)
              + bcls_ref[...])

    out_ref[...] = jnp.zeros_like(out_ref)        # keep pad lanes defined
    out_ref[:, :Z_DIM] = z
    out_ref[:, Z_DIM:HEAD_OUT] = logits


# ------------------------------- wrapper ------------------------------------
def modelbase_forward(x_nchw, params):
    """Returns (logits, z) == (self.model(x), self.net(x)) for probabilistic=False."""
    wc, bc, wf, bf, wcls, bcls = params

    # Single tiny producer fusion: NHWC transpose + 'SAME' zero padding.  The
    # 9x im2col expansion / K-padding / dtype-cast HBM roundtrip of the
    # previous version is gone -- patches are built inside the kernel.
    x_pad = jnp.pad(jnp.transpose(x_nchw, (0, 2, 3, 1)).astype(jnp.float32),
                    ((0, 0), (1, 1), (1, 1), (0, 0)))

    # Fold the GAP 1/HW scale into the fc weight (kernel sums instead of means).
    wf_s = wf * (1.0 / HW)

    out = pl.pallas_call(
        modelbase_kernel,
        out_shape=jax.ShapeDtypeStruct((B, OUT_PAD), jnp.float32),
        in_specs=[pl.BlockSpec(memory_space=pltpu.MemorySpace.VMEM)
                  for _ in range(7)],
        out_specs=pl.BlockSpec(memory_space=pltpu.MemorySpace.VMEM),
        cost_estimate=pl.CostEstimate(flops=_FLOPS, transcendentals=0,
                                      bytes_accessed=_BYTES),
    )(x_pad, wc, bc, wf_s, bf, wcls, bcls)

    # Packed slab -> (logits, z) tuple expected by forward(); downstream code
    # that can consume the slab directly may skip these two slices.
    z = out[:, :Z_DIM]
    logits = out[:, Z_DIM:HEAD_OUT]
    return logits, z


def modelbase_reference(x_nchw, params):
    """Pure-JAX f32 reference of the same simplified forward pass."""
    wc, bc, wf, bf, wcls, bcls = params
    x = jnp.transpose(x_nchw, (0, 2, 3, 1)).astype(jnp.float32)
    xp = jnp.pad(x, ((0, 0), (1, 1), (1, 1), (0, 0)))
    cols = [xp[:, dy:dy + H, dx:dx + W, :] for dy in range(3) for dx in range(3)]
    patches = jnp.concatenate(cols, axis=-1).reshape(BHW, K)
    act = jnp.maximum(patches @ wc + bc, 0.0)
    feat = jnp.mean(act.reshape(B, HW, C1), axis=1)
    z = feat @ wf + bf
    logits = z @ wcls + bcls
    return logits, z


def init_params(key):
    # NOTE: wc is stored im2col-style (row = (dy*3+dx)*CIN + c).  If real
    # PyTorch conv weights (Cout, Cin, 3, 3) are ever imported, permute to
    # (kh, kw, Cin, Cout).reshape(9*Cin, Cout) first or results will be wrong.
    k1, k2, k3, k4, k5, k6 = jax.random.split(key, 6)
    wc = jax.random.normal(k1, (K, C1), jnp.float32) * 0.1
    bc = jax.random.normal(k2, (1, C1), jnp.float32) * 0.01
    wf = jax.random.normal(k3, (C1, Z_DIM), jnp.float32) * 0.1
    bf = jax.random.normal(k4, (1, Z_DIM), jnp.float32) * 0.01
    wcls = jax.random.normal(k5, (Z_DIM, NUM_CLASSES), jnp.float32) * 0.1
    bcls = jax.random.normal(k6, (1, NUM_CLASSES), jnp.float32) * 0.01
    return wc, bc, wf, bf, wcls, bcls


if __name__ == "__main__":
    key = jax.random.PRNGKey(0)
    kx, kp = jax.random.split(key)
    x = jax.random.normal(kx, (B, CIN, H, W), jnp.float32)   # NCHW like PyTorch
    params = init_params(kp)

    logits, z = jax.jit(modelbase_forward)(x, params)
    jax.block_until_ready((logits, z))

    assert logits.shape == (B, NUM_CLASSES) and z.shape == (B, Z_DIM)

    # Numerical sanity vs. pure-JAX f32 reference (tolerance covers MXU
    # default-precision f32 matmuls on TPU).
    ref_logits, ref_z = jax.jit(modelbase_reference)(x, params)
    assert jnp.allclose(z, ref_z, atol=1e-2, rtol=1e-2)
    assert jnp.allclose(logits, ref_logits, atol=1e-2, rtol=1e-2)

    print("KERNEL_OK")
</pallas_src>

<mosaic_0001>
module attributes {stable_mosaic.version = 11 : i64} {
  func.func @modelbase_kernel(%arg0: memref<2x18x18x3xf32, #tpu.memory_space<vmem>>, %arg1: memref<27x16xf32, #tpu.memory_space<vmem>>, %arg2: memref<1x16xf32, #tpu.memory_space<vmem>>, %arg3: memref<16x32xf32, #tpu.memory_space<vmem>>, %arg4: memref<1x32xf32, #tpu.memory_space<vmem>>, %arg5: memref<32x4xf32, #tpu.memory_space<vmem>>, %arg6: memref<1x4xf32, #tpu.memory_space<vmem>>, %arg7: memref<2x128xf32, #tpu.memory_space<vmem>>) attributes {dimension_semantics = [], scalar_prefetch = 0 : i64, scratch_operands = 0 : i64, tpu.core_type = #tpu.core_type<tc>} {
    %c0 = arith.constant 0 : index
    %c0_0 = arith.constant 0 : index
    %c0_1 = arith.constant 0 : index
    %c0_2 = arith.constant 0 : index
    %0 = vector.load %arg0[%c0, %c0_0, %c0_1, %c0_2] : memref<2x18x18x3xf32, #tpu.memory_space<vmem>>, vector<2x16x16x3xf32>
    %1 = vector.shape_cast %0 : vector<2x16x16x3xf32> to vector<512x3xf32>
    %c0_3 = arith.constant 0 : index
    %c0_4 = arith.constant 0 : index
    %2 = vector.load %arg1[%c0_3, %c0_4] : memref<27x16xf32, #tpu.memory_space<vmem>>, vector<3x16xf32>
    %cst = arith.constant dense<0.000000e+00> : vector<512x16xf32>
    %3 = tpu.matmul %1, %2, %cst {dimension_numbers = #tpu.dot_dimension_numbers<[1], [0], [0], [1], [0, 0, 1, 1], [], []>} : vector<512x3xf32>, vector<3x16xf32>, vector<512x16xf32> -> vector<512x16xf32>
    %c0_5 = arith.constant 0 : index
    %c0_6 = arith.constant 0 : index
    %c1 = arith.constant 1 : index
    %c0_7 = arith.constant 0 : index
    %4 = vector.load %arg0[%c0_5, %c0_6, %c1, %c0_7] : memref<2x18x18x3xf32, #tpu.memory_space<vmem>>, vector<2x16x16x3xf32>
    %5 = vector.shape_cast %4 : vector<2x16x16x3xf32> to vector<512x3xf32>
    %c3 = arith.constant 3 : index
    %c0_8 = arith.constant 0 : index
    %6 = vector.load %arg1[%c3, %c0_8] : memref<27x16xf32, #tpu.memory_space<vmem>>, vector<3x16xf32>
    %cst_9 = arith.constant dense<0.000000e+00> : vector<512x16xf32>
    %7 = tpu.matmul %5, %6, %cst_9 {dimension_numbers = #tpu.dot_dimension_numbers<[1], [0], [0], [1], [0, 0, 1, 1], [], []>} : vector<512x3xf32>, vector<3x16xf32>, vector<512x16xf32> -> vector<512x16xf32>
    %8 = arith.addf %3, %7 : vector<512x16xf32>
    %c0_10 = arith.constant 0 : index
    %c0_11 = arith.constant 0 : index
    %c2 = arith.constant 2 : index
    %c0_12 = arith.constant 0 : index
    %9 = vector.load %arg0[%c0_10, %c0_11, %c2, %c0_12] : memref<2x18x18x3xf32, #tpu.memory_space<vmem>>, vector<2x16x16x3xf32>
    %10 = vector.shape_cast %9 : vector<2x16x16x3xf32> to vector<512x3xf32>
    %c6 = arith.constant 6 : index
    %c0_13 = arith.constant 0 : index
    %11 = vector.load %arg1[%c6, %c0_13] : memref<27x16xf32, #tpu.memory_space<vmem>>, vector<3x16xf32>
    %cst_14 = arith.constant dense<0.000000e+00> : vector<512x16xf32>
    %12 = tpu.matmul %10, %11, %cst_14 {dimension_numbers = #tpu.dot_dimension_numbers<[1], [0], [0], [1], [0, 0, 1, 1], [], []>} : vector<512x3xf32>, vector<3x16xf32>, vector<512x16xf32> -> vector<512x16xf32>
    %13 = arith.addf %8, %12 : vector<512x16xf32>
    %c0_15 = arith.constant 0 : index
    %c1_16 = arith.constant 1 : index
    %c0_17 = arith.constant 0 : index
    %c0_18 = arith.constant 0 : index
    %14 = vector.load %arg0[%c0_15, %c1_16, %c0_17, %c0_18] : memref<2x18x18x3xf32, #tpu.memory_space<vmem>>, vector<2x16x16x3xf32>
    %15 = vector.shape_cast %14 : vector<2x16x16x3xf32> to vector<512x3xf32>
    %c9 = arith.constant 9 : index
    %c0_19 = arith.constant 0 : index
    %16 = vector.load %arg1[%c9, %c0_19] : memref<27x16xf32, #tpu.memory_space<vmem>>, vector<3x16xf32>
    %cst_20 = arith.constant dense<0.000000e+00> : vector<512x16xf32>
    %17 = tpu.matmul %15, %16, %cst_20 {dimension_numbers = #tpu.dot_dimension_numbers<[1], [0], [0], [1], [0, 0, 1, 1], [], []>} : vector<512x3xf32>, vector<3x16xf32>, vector<512x16xf32> -> vector<512x16xf32>
    %18 = arith.addf %13, %17 : vector<512x16xf32>
    %c0_21 = arith.constant 0 : index
    %c1_22 = arith.constant 1 : index
    %c1_23 = arith.constant 1 : index
    %c0_24 = arith.constant 0 : index
    %19 = vector.load %arg0[%c0_21, %c1_22, %c1_23, %c0_24] : memref<2x18x18x3xf32, #tpu.memory_space<vmem>>, vector<2x16x16x3xf32>
    %20 = vector.shape_cast %19 : vector<2x16x16x3xf32> to vector<512x3xf32>
    %c12 = arith.constant 12 : index
    %c0_25 = arith.constant 0 : index
    %21 = vector.load %arg1[%c12, %c0_25] : memref<27x16xf32, #tpu.memory_space<vmem>>, vector<3x16xf32>
    %cst_26 = arith.constant dense<0.000000e+00> : vector<512x16xf32>
    %22 = tpu.matmul %20, %21, %cst_26 {dimension_numbers = #tpu.dot_dimension_numbers<[1], [0], [0], [1], [0, 0, 1, 1], [], []>} : vector<512x3xf32>, vector<3x16xf32>, vector<512x16xf32> -> vector<512x16xf32>
    %23 = arith.addf %18, %22 : vector<512x16xf32>
    %c0_27 = arith.constant 0 : index
    %c1_28 = arith.constant 1 : index
    %c2_29 = arith.constant 2 : index
    %c0_30 = arith.constant 0 : index
    %24 = vector.load %arg0[%c0_27, %c1_28, %c2_29, %c0_30] : memref<2x18x18x3xf32, #tpu.memory_space<vmem>>, vector<2x16x16x3xf32>
    %25 = vector.shape_cast %24 : vector<2x16x16x3xf32> to vector<512x3xf32>
    %c15 = arith.constant 15 : index
    %c0_31 = arith.constant 0 : index
    %26 = vector.load %arg1[%c15, %c0_31] : memref<27x16xf32, #tpu.memory_space<vmem>>, vector<3x16xf32>
    %cst_32 = arith.constant dense<0.000000e+00> : vector<512x16xf32>
    %27 = tpu.matmul %25, %26, %cst_32 {dimension_numbers = #tpu.dot_dimension_numbers<[1], [0], [0], [1], [0, 0, 1, 1], [], []>} : vector<512x3xf32>, vector<3x16xf32>, vector<512x16xf32> -> vector<512x16xf32>
    %28 = arith.addf %23, %27 : vector<512x16xf32>
    %c0_33 = arith.constant 0 : index
    %c2_34 = arith.constant 2 : index
    %c0_35 = arith.constant 0 : index
    %c0_36 = arith.constant 0 : index
    %29 = vector.load %arg0[%c0_33, %c2_34, %c0_35, %c0_36] : memref<2x18x18x3xf32, #tpu.memory_space<vmem>>, vector<2x16x16x3xf32>
    %30 = vector.shape_cast %29 : vector<2x16x16x3xf32> to vector<512x3xf32>
    %c18 = arith.constant 18 : index
    %c0_37 = arith.constant 0 : index
    %31 = vector.load %arg1[%c18, %c0_37] : memref<27x16xf32, #tpu.memory_space<vmem>>, vector<3x16xf32>
    %cst_38 = arith.constant dense<0.000000e+00> : vector<512x16xf32>
    %32 = tpu.matmul %30, %31, %cst_38 {dimension_numbers = #tpu.dot_dimension_numbers<[1], [0], [0], [1], [0, 0, 1, 1], [], []>} : vector<512x3xf32>, vector<3x16xf32>, vector<512x16xf32> -> vector<512x16xf32>
    %33 = arith.addf %28, %32 : vector<512x16xf32>
    %c0_39 = arith.constant 0 : index
    %c2_40 = arith.constant 2 : index
    %c1_41 = arith.constant 1 : index
    %c0_42 = arith.constant 0 : index
    %34 = vector.load %arg0[%c0_39, %c2_40, %c1_41, %c0_42] : memref<2x18x18x3xf32, #tpu.memory_space<vmem>>, vector<2x16x16x3xf32>
    %35 = vector.shape_cast %34 : vector<2x16x16x3xf32> to vector<512x3xf32>
    %c21 = arith.constant 21 : index
    %c0_43 = arith.constant 0 : index
    %36 = vector.load %arg1[%c21, %c0_43] : memref<27x16xf32, #tpu.memory_space<vmem>>, vector<3x16xf32>
    %cst_44 = arith.constant dense<0.000000e+00> : vector<512x16xf32>
    %37 = tpu.matmul %35, %36, %cst_44 {dimension_numbers = #tpu.dot_dimension_numbers<[1], [0], [0], [1], [0, 0, 1, 1], [], []>} : vector<512x3xf32>, vector<3x16xf32>, vector<512x16xf32> -> vector<512x16xf32>
    %38 = arith.addf %33, %37 : vector<512x16xf32>
    %c0_45 = arith.constant 0 : index
    %c2_46 = arith.constant 2 : index
    %c2_47 = arith.constant 2 : index
    %c0_48 = arith.constant 0 : index
    %39 = vector.load %arg0[%c0_45, %c2_46, %c2_47, %c0_48] : memref<2x18x18x3xf32, #tpu.memory_space<vmem>>, vector<2x16x16x3xf32>
    %40 = vector.shape_cast %39 : vector<2x16x16x3xf32> to vector<512x3xf32>
    %c24 = arith.constant 24 : index
    %c0_49 = arith.constant 0 : index
    %41 = vector.load %arg1[%c24, %c0_49] : memref<27x16xf32, #tpu.memory_space<vmem>>, vector<3x16xf32>
    %cst_50 = arith.constant dense<0.000000e+00> : vector<512x16xf32>
    %42 = tpu.matmul %40, %41, %cst_50 {dimension_numbers = #tpu.dot_dimension_numbers<[1], [0], [0], [1], [0, 0, 1, 1], [], []>} : vector<512x3xf32>, vector<3x16xf32>, vector<512x16xf32> -> vector<512x16xf32>
    %43 = arith.addf %38, %42 : vector<512x16xf32>
    %c0_51 = arith.constant 0 : index
    %c0_52 = arith.constant 0 : index
    %44 = vector.load %arg2[%c0_51, %c0_52] : memref<1x16xf32, #tpu.memory_space<vmem>>, vector<1x16xf32>
    %45 = vector.broadcast %44 : vector<1x16xf32> to vector<512x16xf32>
    %46 = arith.addf %43, %45 : vector<512x16xf32>
    %cst_53 = arith.constant 0.000000e+00 : f32
    %47 = vector.broadcast %cst_53 : f32 to vector<512x16xf32>
    %48 = arith.maximumf %46, %47 : vector<512x16xf32>
    %49 = tpu.iota {dimensions = array<i32: 1>} : vector<2x512xi32>
    %50 = tpu.iota {dimensions = array<i32: 0>} : vector<2x512xi32>
    %c256_i32 = arith.constant 256 : i32
    %51 = vector.broadcast %c256_i32 : i32 to vector<2x512xi32>
    %52 = arith.muli %50, %51 : vector<2x512xi32>
    %53 = arith.cmpi sge, %49, %52 : vector<2x512xi32>
    %c256_i32_54 = arith.constant 256 : i32
    %54 = vector.broadcast %c256_i32_54 : i32 to vector<2x512xi32>
    %55 = arith.addi %52, %54 : vector<2x512xi32>
    %56 = arith.cmpi slt, %49, %55 : vector<2x512xi32>
    %57 = arith.andi %53, %56 : vector<2x512xi1>
    %58 = arith.extui %57 : vector<2x512xi1> to vector<2x512xi32>
    %59 = arith.sitofp %58 : vector<2x512xi32> to vector<2x512xf32>
    %cst_55 = arith.constant dense<0.000000e+00> : vector<2x16xf32>
    %60 = tpu.matmul %59, %48, %cst_55 {dimension_numbers = #tpu.dot_dimension_numbers<[1], [0], [0], [1], [0, 0, 1, 1], [], []>} : vector<2x512xf32>, vector<512x16xf32>, vector<2x16xf32> -> vector<2x16xf32>
    %c0_56 = arith.constant 0 : index
    %c0_57 = arith.constant 0 : index
    %61 = vector.load %arg3[%c0_56, %c0_57] : memref<16x32xf32, #tpu.memory_space<vmem>>, vector<16x32xf32>
    %cst_58 = arith.constant dense<0.000000e+00> : vector<2x32xf32>
    %62 = tpu.matmul %60, %61, %cst_58 {dimension_numbers = #tpu.dot_dimension_numbers<[1], [0], [0], [1], [0, 0, 1, 1], [], []>} : vector<2x16xf32>, vector<16x32xf32>, vector<2x32xf32> -> vector<2x32xf32>
    %c0_59 = arith.constant 0 : index
    %c0_60 = arith.constant 0 : index
    %63 = vector.load %arg4[%c0_59, %c0_60] : memref<1x32xf32, #tpu.memory_space<vmem>>, vector<1x32xf32>
    %64 = vector.broadcast %63 : vector<1x32xf32> to vector<2x32xf32>
    %65 = arith.addf %62, %64 : vector<2x32xf32>
    %c0_61 = arith.constant 0 : index
    %c0_62 = arith.constant 0 : index
    %66 = vector.load %arg5[%c0_61, %c0_62] : memref<32x4xf32, #tpu.memory_space<vmem>>, vector<32x4xf32>
    %cst_63 = arith.constant dense<0.000000e+00> : vector<2x4xf32>
    %67 = tpu.matmul %65, %66, %cst_63 {dimension_numbers = #tpu.dot_dimension_numbers<[1], [0], [0], [1], [0, 0, 1, 1], [], []>} : vector<2x32xf32>, vector<32x4xf32>, vector<2x4xf32> -> vector<2x4xf32>
    %c0_64 = arith.constant 0 : index
    %c0_65 = arith.constant 0 : index
    %68 = vector.load %arg6[%c0_64, %c0_65] : memref<1x4xf32, #tpu.memory_space<vmem>>, vector<1x4xf32>
    %69 = vector.broadcast %68 : vector<1x4xf32> to vector<2x4xf32>
    %70 = arith.addf %67, %69 : vector<2x4xf32>
    %cst_66 = arith.constant 0.000000e+00 : f32
    %71 = vector.broadcast %cst_66 : f32 to vector<2x128xf32>
    %c0_67 = arith.constant 0 : index
    %c0_68 = arith.constant 0 : index
    %72 = vector.load %arg7[%c0_67, %c0_68] : memref<2x128xf32, #tpu.memory_space<vmem>>, vector<2x128xf32>
    tpu.vector_store %arg7[%c0_67, %c0_68], %71 {strides = array<i32>} : memref<2x128xf32, #tpu.memory_space<vmem>>, vector<2x128xf32>,
    %c0_69 = arith.constant 0 : index
    %c0_70 = arith.constant 0 : index
    %73 = vector.load %arg7[%c0_69, %c0_70] : memref<2x128xf32, #tpu.memory_space<vmem>>, vector<2x32xf32>
    tpu.vector_store %arg7[%c0_69, %c0_70], %65 {strides = array<i32>} : memref<2x128xf32, #tpu.memory_space<vmem>>, vector<2x32xf32>,
    %c0_71 = arith.constant 0 : index
    %c32 = arith.constant 32 : index
    %74 = vector.load %arg7[%c0_71, %c32] : memref<2x128xf32, #tpu.memory_space<vmem>>, vector<2x4xf32>
    tpu.vector_store %arg7[%c0_71, %c32], %70 {strides = array<i32>} : memref<2x128xf32, #tpu.memory_space<vmem>>, vector<2x4xf32>,
    return
  }
}

</mosaic_0001>

<bundles_post_ra>
// kernel: modelbase_forward.1
= control target key start
LH: loop header
LB: loop body
LE: loop exit
PB: predicated region body
PF: predicated region fallthrough
CT: control target
= control target key end

     0   :  { %vm349_vm0 = vcmask 1042432   ;;  %vm156_vm1 = vcmask 23552   ;;  %vm9908_vm14 = vmmov 0   ;;  %vm6596_vm15 = vcmask 130048   ;;  %s12671_s1 = inlined_call_operand.vmem [shape: f32[27,16], index: 1, kind: input, shape index: {}]   ;;  %s12672_s0 = inlined_call_operand.vmem [shape: f32[2,18,18,3], index: 0, kind: input, shape index: {}]   ;;  %s12673_s2 = inlined_call_operand.vmem [shape: f32[1,16], index: 2, kind: input, shape index: {}]   ;;  %s12674_s3 = inlined_call_operand.vmem [shape: f32[16,32], index: 3, kind: input, shape index: {}]   ;;  %s12675_s7 = inlined_call_operand.vmem [shape: f32[2,128], index: 7, kind: output, shape index: {}]   ;;  %s12676_s5 = inlined_call_operand.vmem [shape: f32[32,4], index: 5, kind: input, shape index: {}]   ;;  %s12677_s4 = inlined_call_operand.vmem [shape: f32[1,32], index: 4, kind: input, shape index: {}]   ;;  %s12678_s6 = inlined_call_operand.vmem [shape: f32[1,4], index: 6, kind: input, shape index: {}]  }
   0x1   :  { %v155_v0 = vld [vmem:[%s12671_s1 + $0x3] sm:$0x7]  ;;  %v9957_v1 = vld [vmem:[%s12671_s1 + $0xc] sm:$0x7]  ;;  %v7092_v3 = vld [vmem:[%s12672_s0 + $0x19] sm:$0xff] }
   0x2   :  { %v91_v2 = vld [vmem:[%s12672_s0 + $0x1] sm:$0xff]  ;;  %8413 = vmatprep.subr.msk.mxu1 %vm349_vm0, %v155_v0  ;;  %8805 = vmatprep.subr.msk.mxu0 %vm349_vm0, %v9957_v1  ;;  %v92_v4 = vld [vmem:[%s12672_s0 + $0x9] sm:$0xff]  ;;  %v7094_v7 = vld [vmem:[%s12672_s0 + $0x31] sm:$0xff] }
   0x3   :  { %v7093_v5 = vld [vmem:[%s12672_s0 + $0x21] sm:$0xff]  ;;  %8414 = vmatpush3.msk.msra.mxu1 %vm349_vm0, %v155_v0  ;;  %8415 = vmatprep.mubr.msk.f32.mxu1 %vm156_vm1, %v91_v2  ;;  %v3510_v6 = vld [vmem:[%s12671_s1 + $0xf] sm:$0x7]  ;;  %v7095_v8 = vld [vmem:[%s12672_s0 + $0x39] sm:$0xff] }
   0x4   :  { %8806 = vmatpush3.msk.msra.mxu0 %vm349_vm0, %v9957_v1  ;;  %8807 = vmatprep.mubr.msk.f32.mxu0 %vm156_vm1, %v7092_v3  ;;  %v7096_v9 = vld [vmem:[%s12672_s0 + $0x49] sm:$0xff]  ;;  %v7097_v10 = vld [vmem:[%s12672_s0 + $0x51] sm:$0xff]  ;;  %v7098_v11 = vld [vmem:[%s12672_s0 + $0x61] sm:$0xff] }
   0x5   :  { %8416 = vmatmul.mubr.msk.f32.vlgmr.msra.gmra.mrb[0].mxu1 %vm156_vm1, %v92_v4  ;;  %8808 = vmatmul.mubr.msk.f32.vlgmr.msra.gmra.mrb[0].mxu0 %vm156_vm1, %v7093_v5  ;;  %v90_v12 = vld [vmem:[%s12671_s1] sm:$0x7]  ;;  %v7099_v13 = vld [vmem:[%s12672_s0 + $0x69] sm:$0xff]  ;;  %v7102_v16 = vld [vmem:[%s12672_s0 + $0x91] sm:$0xff] }
   0x6   :  { %8903 = vmatprep.subr.msk.mxu0 %vm349_vm0, %v3510_v6  ;;  %8418 = vmatprep.mubr.msk.f32.mxu1 %vm156_vm1, %v7092_v3  ;;  %v7100_v14 = vld [vmem:[%s12672_s0 + $0x79] sm:$0xff]  ;;  %v7101_v15 = vld [vmem:[%s12672_s0 + $0x81] sm:$0xff]  ;;  %v10035_v17 = vld [vmem:[%s12671_s1 + $0x12] sm:$0x7] }
   0x7   :  { %8904 = vmatpush3.msk.msra.mxu0 %vm349_vm0, %v3510_v6  ;;  %8810 = vmatprep.mubr.msk.f32.mxu0 %vm156_vm1, %v7094_v7  ;;  %v7103_v18 = vld [vmem:[%s12672_s0 + $0x99] sm:$0xff]  ;;  %v7104_v19 = vld [vmem:[%s12672_s0 + $0xa9] sm:$0xff]  ;;  %v7105_v20 = vld [vmem:[%s12672_s0 + $0xb1] sm:$0xff] }
   0x8   :  { %8511 = vmatprep.subr.msk.mxu1 %vm349_vm0, %v90_v12  ;;  %9001 = vmatprep.subr.msk.mxu0 %vm349_vm0, %v10035_v17  ;;  %v7106_v21 = vld [vmem:[%s12672_s0 + $0xc1] sm:$0xff]  ;;  %v7107_v22 = vld [vmem:[%s12672_s0 + $0xc9] sm:$0xff]  ;;  %v7108_v23 = vld [vmem:[%s12672_s0 + $0xd9] sm:$0xff] }
   0x9   :  { %8419 = vmatmul.mubr.msk.f32.gmra.mrb[2].mxu1 %vm156_vm1, %v7093_v5  ;;  %8811 = vmatmul.mubr.msk.f32.gmra.mrb[2].mxu0 %vm156_vm1, %v7095_v8  ;;  %v7109_v24 = vld [vmem:[%s12672_s0 + $0xe1] sm:$0xff]  ;;  %v7110_v25 = vld [vmem:[%s12672_s0 + $0xf1] sm:$0xff]  ;;  %v7111_v26 = vld [vmem:[%s12672_s0 + $0xf9] sm:$0xff] }
   0xa   :  { %8421 = vmatprep.mubr.msk.f32.mxu1 %vm156_vm1, %v7094_v7  ;;  %8813 = vmatprep.mubr.msk.f32.mxu0 %vm156_vm1, %v7096_v9  ;;  %v7112_v27 = vld [vmem:[%s12672_s0 + $0x109] sm:$0xff]  ;;  %v7113_v28 = vld [vmem:[%s12672_s0 + $0x111] sm:$0xff]  ;;  %v7114_v29 = vld [vmem:[%s12672_s0 + $0x121] sm:$0xff] }
   0xb   :  { %8512 = vmatpush3.msk.msra.mxu1 %vm349_vm0, %v90_v12  ;;  %v7115_v30 = vld [vmem:[%s12672_s0 + $0x129] sm:$0xff]  ;;  %v7116_v31 = vld [vmem:[%s12672_s0 + $0x139] sm:$0xff]  ;;  %v7117_v32 = vld [vmem:[%s12672_s0 + $0x141] sm:$0xff] }
   0xc   :  { %v7118_v33 = vld [vmem:[%s12672_s0 + $0x151] sm:$0xff]  ;;  %v10124_v34 = vld [vmem:[%s12671_s1 + $0x6] sm:$0x7]  ;;  %v7119_v35 = vld [vmem:[%s12672_s0 + $0x159] sm:$0xff] }
   0xd   :  { %8422 = vmatmul.mubr.msk.f32.gmra.mrb[4].mxu1 %vm156_vm1, %v7095_v8  ;;  %8814 = vmatmul.mubr.msk.f32.gmra.mrb[4].mxu0 %vm156_vm1, %v7097_v10  ;;  %v7120_v36 = vld [vmem:[%s12672_s0 + $0x169] sm:$0xff]  ;;  %v7121_v37 = vld [vmem:[%s12672_s0 + $0x171] sm:$0xff]  ;;  %v7122_v38 = vld [vmem:[%s12672_s0 + $0x181] sm:$0xff] }
   0xe   :  { %8424 = vmatprep.mubr.msk.f32.mxu1 %vm156_vm1, %v7096_v9  ;;  %8816 = vmatprep.mubr.msk.f32.mxu0 %vm156_vm1, %v7098_v11  ;;  %v7123_v39 = vld [vmem:[%s12672_s0 + $0x189] sm:$0xff]  ;;  %v123_v40 = vld [vmem:[%s12672_s0 + $0x1b1] sm:$0xff]  ;;  %v124_v42 = vld [vmem:[%s12672_s0 + $0x1b9] sm:$0xff] }
   0xf   :  { %8609 = vmatprep.subr.msk.mxu1 %vm349_vm0, %v10124_v34  ;;  %v7124_v41 = vld [vmem:[%s12672_s0 + $0x1c9] sm:$0xff]  ;;  %v7125_v43 = vld [vmem:[%s12672_s0 + $0x1d1] sm:$0xff]  ;;  %v7126_v44 = vld [vmem:[%s12672_s0 + $0x1e1] sm:$0xff] }
  0x10   :  { %v7127_v45 = vld [vmem:[%s12672_s0 + $0x1e9] sm:$0xff]  ;;  %v7128_v46 = vld [vmem:[%s12672_s0 + $0x1f9] sm:$0xff]  ;;  %v7129_v47 = vld [vmem:[%s12672_s0 + $0x201] sm:$0xff] }
  0x11   :  { %8425 = vmatmul.mubr.msk.f32.gmra.mrb[6].mxu1 %vm156_vm1, %v7097_v10  ;;  %8817 = vmatmul.mubr.msk.f32.gmra.mrb[6].mxu0 %vm156_vm1, %v7099_v13  ;;  %v7130_v48 = vld [vmem:[%s12672_s0 + $0x211] sm:$0xff]  ;;  %v7131_v49 = vld [vmem:[%s12672_s0 + $0x219] sm:$0xff]  ;;  %v7132_v50 = vld [vmem:[%s12672_s0 + $0x229] sm:$0xff] }
  0x12   :  { %8427 = vmatprep.mubr.msk.f32.mxu1 %vm156_vm1, %v7098_v11  ;;  %8819 = vmatprep.mubr.msk.f32.mxu0 %vm156_vm1, %v7100_v14  ;;  %v7133_v51 = vld [vmem:[%s12672_s0 + $0x231] sm:$0xff]  ;;  %v7134_v52 = vld [vmem:[%s12672_s0 + $0x241] sm:$0xff]  ;;  %v7135_v53 = vld [vmem:[%s12672_s0 + $0x249] sm:$0xff] }
  0x13   :  { %v10222_v54 = vld [vmem:[%s12672_s0 + $0x1a] sm:$0xff]  ;;  %v10232_v55 = vld [vmem:[%s12672_s0 + $0x22] sm:$0xff]  ;;  %v10240_v57 = vld [vmem:[%s12672_s0 + $0x32] sm:$0xff] }
  0x14   :  { %v137_v56 = vld [vmem:[%s12672_s0 + $0x259] sm:$0xff]  ;;  %v10248_v58 = vld [vmem:[%s12671_s1 + $0x15] sm:$0x7]  ;;  %v138_v59 = vld [vmem:[%s12672_s0 + $0x261] sm:$0xff] }
  0x15   :  { %8428 = vmatmul.mubr.msk.f32.gmra.mrb[8].mxu1 %vm156_vm1, %v7099_v13  ;;  %8820 = vmatmul.mubr.msk.f32.gmra.mrb[8].mxu0 %vm156_vm1, %v7101_v15  ;;  %v10259_v60 = vld [vmem:[%s12672_s0 + $0x3a] sm:$0xff]  ;;  %v139_v61 = vld [vmem:[%s12672_s0 + $0x271] sm:$0xff]  ;;  %v141_v2 = vld [vmem:[%s12672_s0 + $0x289] sm:$0xff] }
  0x16   :  { %8430 = vmatprep.mubr.msk.f32.mxu1 %vm156_vm1, %v7100_v14  ;;  %8822 = vmatprep.mubr.msk.f32.mxu0 %vm156_vm1, %v7102_v16  ;;  %v10269_v62 = vld [vmem:[%s12672_s0 + $0x4a] sm:$0xff]  ;;  %v140_v63 = vld [vmem:[%s12672_s0 + $0x279] sm:$0xff]  ;;  %v10293_v3 = vld [vmem:[%s12672_s0 + $0x62] sm:$0xff] }
  0x17   :  { %v10285_v0 = vld [vmem:[%s12672_s0 + $0x52] sm:$0xff]  ;;  %v10307_v5 = vld [vmem:[%s12672_s0 + $0x6a] sm:$0xff]  ;;  %v143_v6 = vld [vmem:[%s12672_s0 + $0x2a1] sm:$0xff] }
  0x18   :  { %v142_v4 = vld [vmem:[%s12672_s0 + $0x291] sm:$0xff]  ;;  %v10315_v7 = vld [vmem:[%s12672_s0 + $0x7a] sm:$0xff]  ;;  %v144_v8 = vld [vmem:[%s12672_s0 + $0x2a9] sm:$0xff] }
  0x19   :  { %8431 = vmatmul.mubr.msk.f32.gmra.mrb[10].mxu1 %vm156_vm1, %v7101_v15  ;;  %8823 = vmatmul.mubr.msk.f32.gmra.mrb[10].mxu0 %vm156_vm1, %v7103_v18  ;;  %v10329_v9 = vld [vmem:[%s12672_s0 + $0x82] sm:$0xff]  ;;  %v145_v10 = vld [vmem:[%s12672_s0 + $0x2b9] sm:$0xff]  ;;  %v147_v14 = vld [vmem:[%s12672_s0 + $0x2d1] sm:$0xff] }
  0x1a   :  { %8433 = vmatprep.mubr.msk.f32.mxu1 %vm156_vm1, %v7102_v16  ;;  %8825 = vmatprep.mubr.msk.f32.mxu0 %vm156_vm1, %v7104_v19  ;;  %v10337_v11 = vld [vmem:[%s12672_s0 + $0x92] sm:$0xff]  ;;  %v146_v12 = vld [vmem:[%s12672_s0 + $0x2c1] sm:$0xff]  ;;  %v10359_v15 = vld [vmem:[%s12672_s0 + $0xaa] sm:$0xff] }
  0x1b   :  { %v10351_v13 = vld [vmem:[%s12672_s0 + $0x9a] sm:$0xff] }
  0x1c   :  { %v148_v16 = vld [vmem:[%s12672_s0 + $0x2d9] sm:$0xff] }
  0x1d   :  { %8434 = vmatmul.mubr.msk.f32.gmra.mrb[12].mxu1 %vm156_vm1, %v7103_v18  ;;  %8826 = vmatmul.mubr.msk.f32.gmra.mrb[12].mxu0 %vm156_vm1, %v7105_v20  ;;  %v149_v18 = vld [vmem:[%s12672_s0 + $0x2e9] sm:$0xff] }
  0x1e   :  { %8436 = vmatprep.mubr.msk.f32.mxu1 %vm156_vm1, %v7104_v19  ;;  %8828 = vmatprep.mubr.msk.f32.mxu0 %vm156_vm1, %v7106_v21  ;;  %v10381_v19 = vld [vmem:[%s12672_s0 + $0xc2] sm:$0xff] }
  0x21   :  { %8437 = vmatmul.mubr.msk.f32.gmra.mrb[14].mxu1 %vm156_vm1, %v7105_v20  ;;  %8829 = vmatmul.mubr.msk.f32.gmra.mrb[14].mxu0 %vm156_vm1, %v7107_v22  ;;  %v150_v20 = vld [vmem:[%s12672_s0 + $0x2f1] sm:$0xff] }
  0x22   :  { %8439 = vmatprep.mubr.msk.f32.mxu1 %vm156_vm1, %v7106_v21  ;;  %8831 = vmatprep.mubr.msk.f32.mxu0 %vm156_vm1, %v7108_v23  ;;  %v10395_v21 = vld [vmem:[%s12672_s0 + $0xca] sm:$0xff] }
  0x25   :  { %8440 = vmatmul.mubr.msk.f32.gmra.mrb[16].mxu1 %vm156_vm1, %v7107_v22  ;;  %8832 = vmatmul.mubr.msk.f32.gmra.mrb[16].mxu0 %vm156_vm1, %v7109_v24  ;;  %v151_v22 = vld [vmem:[%s12672_s0 + $0x301] sm:$0xff] }
  0x26   :  { %8442 = vmatprep.mubr.msk.f32.mxu1 %vm156_vm1, %v7108_v23  ;;  %8834 = vmatprep.mubr.msk.f32.mxu0 %vm156_vm1, %v7110_v25  ;;  %v10403_v23 = vld [vmem:[%s12672_s0 + $0xda] sm:$0xff] }
  0x29   :  { %8443 = vmatmul.mubr.msk.f32.gmra.mrb[18].mxu1 %vm156_vm1, %v7109_v24  ;;  %8835 = vmatmul.mubr.msk.f32.gmra.mrb[18].mxu0 %vm156_vm1, %v7111_v26  ;;  %v152_v24 = vld [vmem:[%s12672_s0 + $0x309] sm:$0xff] }
  0x2a   :  { %8445 = vmatprep.mubr.msk.f32.mxu1 %vm156_vm1, %v7110_v25  ;;  %8837 = vmatprep.mubr.msk.f32.mxu0 %vm156_vm1, %v7112_v27  ;;  %v10417_v25 = vld [vmem:[%s12672_s0 + $0xe2] sm:$0xff] }
  0x2d   :  { %8446 = vmatmul.mubr.msk.f32.gmra.mrb[20].mxu1 %vm156_vm1, %v7111_v26  ;;  %8838 = vmatmul.mubr.msk.f32.gmra.mrb[20].mxu0 %vm156_vm1, %v7113_v28  ;;  %v153_v26 = vld [vmem:[%s12672_s0 + $0x319] sm:$0xff] }
  0x2e   :  { %8448 = vmatprep.mubr.msk.f32.mxu1 %vm156_vm1, %v7112_v27  ;;  %8840 = vmatprep.mubr.msk.f32.mxu0 %vm156_vm1, %v7114_v29  ;;  %v10425_v27 = vld [vmem:[%s12672_s0 + $0xf2] sm:$0xff] }
  0x31   :  { %8449 = vmatmul.mubr.msk.f32.gmra.mrb[22].mxu1 %vm156_vm1, %v7113_v28  ;;  %8841 = vmatmul.mubr.msk.f32.gmra.mrb[22].mxu0 %vm156_vm1, %v7115_v30  ;;  %v154_v28 = vld [vmem:[%s12672_s0 + $0x321] sm:$0xff] }
  0x32   :  { %8451 = vmatprep.mubr.msk.f32.mxu1 %vm156_vm1, %v7114_v29  ;;  %8843 = vmatprep.mubr.msk.f32.mxu0 %vm156_vm1, %v7116_v31  ;;  %v10439_v29 = vld [vmem:[%s12672_s0 + $0xfa] sm:$0xff] }
  0x35   :  { %8452 = vmatmul.mubr.msk.f32.gmra.mrb[24].mxu1 %vm156_vm1, %v7115_v30  ;;  %8844 = vmatmul.mubr.msk.f32.gmra.mrb[24].mxu0 %vm156_vm1, %v7117_v32  ;;  %v26_v30 = vld [vmem:[%s12672_s0] sm:$0xff] }
  0x36   :  { %8454 = vmatprep.mubr.msk.f32.mxu1 %vm156_vm1, %v7116_v31  ;;  %8846 = vmatprep.mubr.msk.f32.mxu0 %vm156_vm1, %v7118_v33  ;;  %v10447_v31 = vld [vmem:[%s12672_s0 + $0x10a] sm:$0xff] }
  0x39   :  { %8455 = vmatmul.mubr.msk.f32.gmra.mrb[26].mxu1 %vm156_vm1, %v7117_v32  ;;  %8847 = vmatmul.mubr.msk.f32.gmra.mrb[26].mxu0 %vm156_vm1, %v7119_v35  ;;  %v27_v32 = vld [vmem:[%s12672_s0 + $0x8] sm:$0xff] }
  0x3a   :  { %8457 = vmatprep.mubr.msk.f32.mxu1 %vm156_vm1, %v7118_v33  ;;  %8849 = vmatprep.mubr.msk.f32.mxu0 %vm156_vm1, %v7120_v36  ;;  %v10461_v33 = vld [vmem:[%s12672_s0 + $0x112] sm:$0xff] }
  0x3b   :  { %12720 = vst [vmem:[#allocation2_spill] sm:$0xff] %v10461_v33 }
  0x3d   :  { %8458 = vmatmul.mubr.msk.f32.gmra.mrb[28].mxu1 %vm156_vm1, %v7119_v35  ;;  %8850 = vmatmul.mubr.msk.f32.gmra.mrb[28].mxu0 %vm156_vm1, %v7121_v37  ;;  %v28_v35 = vld [vmem:[%s12672_s0 + $0x18] sm:$0xff] }
  0x3e   :  { %8460 = vmatprep.mubr.msk.f32.mxu1 %vm156_vm1, %v7120_v36  ;;  %8852 = vmatprep.mubr.msk.f32.mxu0 %vm156_vm1, %v7122_v38  ;;  %v10469_v36 = vld [vmem:[%s12672_s0 + $0x122] sm:$0xff]  ;;  %v10483_v38 = vld [vmem:[%s12672_s0 + $0x12a] sm:$0xff] }
  0x3f   :  { %12721 = vst [vmem:[#allocation3_spill] sm:$0xff] %v10469_v36  ;;  %12722 = vst [vmem:[#allocation4_spill] sm:$0xff] %v10483_v38 }
  0x41   :  { %8461 = vmatmul.mubr.msk.f32.gmra.mrb[30].mxu1 %vm156_vm1, %v7121_v37  ;;  %8853 = vmatmul.mubr.msk.f32.gmra.mrb[30].mxu0 %vm156_vm1, %v7123_v39  ;;  %v29_v37 = vld [vmem:[%s12672_s0 + $0x20] sm:$0xff]  ;;  %v10488_v39 = vld [vmem:[%s12672_s0 + $0x30] sm:$0xff] }
  0x42   :  { %8463 = vmatprep.mubr.msk.f32.mxu1 %vm156_vm1, %v123_v40  ;;  %8855 = vmatprep.mubr.msk.f32.mxu0 %vm156_vm1, %v7124_v41  ;;  %v10493_v40 = vld [vmem:[%s12672_s0 + $0x13a] sm:$0xff] }
  0x43   :  { %12723 = vst [vmem:[#allocation5_spill] sm:$0xff] %v10493_v40 }
  0x45   :  { %8464 = vmatmul.mubr.msk.f32.gmra.mrb[32].mxu1 %vm156_vm1, %v124_v42  ;;  %8856 = vmatmul.mubr.msk.f32.gmra.mrb[32].mxu0 %vm156_vm1, %v7125_v43  ;;  %v10517_v42 = vld [vmem:[%s12672_s0 + $0x48] sm:$0xff] }
  0x46   :  { %8466 = vmatprep.mubr.msk.f32.mxu1 %vm156_vm1, %v7124_v41  ;;  %8858 = vmatprep.mubr.msk.f32.mxu0 %vm156_vm1, %v7126_v44  ;;  %v10507_v41 = vld [vmem:[%s12672_s0 + $0x38] sm:$0xff] }
  0x49   :  { %8467 = vmatmul.mubr.msk.f32.gmra.mrb[34].mxu1 %vm156_vm1, %v7125_v43  ;;  %8859 = vmatmul.mubr.msk.f32.gmra.mrb[34].mxu0 %vm156_vm1, %v7127_v45  ;;  %v10522_v43 = vld [vmem:[%s12672_s0 + $0x152] sm:$0xff] }
  0x4a   :  { %8469 = vmatprep.mubr.msk.f32.mxu1 %vm156_vm1, %v7126_v44  ;;  %8861 = vmatprep.mubr.msk.f32.mxu0 %vm156_vm1, %v7128_v46  ;;  %12725 = vst [vmem:[#allocation7_spill] sm:$0xff] %v10522_v43  ;;  %v10535_v44 = vld [vmem:[%s12672_s0 + $0x50] sm:$0xff] }
  0x4d   :  { %8470 = vmatmul.mubr.msk.f32.gmra.mrb[36].mxu1 %vm156_vm1, %v7127_v45  ;;  %8862 = vmatmul.mubr.msk.f32.gmra.mrb[36].mxu0 %vm156_vm1, %v7129_v47  ;;  %v10540_v45 = vld [vmem:[%s12672_s0 + $0x15a] sm:$0xff] }
  0x4e   :  { %8472 = vmatprep.mubr.msk.f32.mxu1 %vm156_vm1, %v7128_v46  ;;  %8864 = vmatprep.mubr.msk.f32.mxu0 %vm156_vm1, %v7130_v48  ;;  %12726 = vst [vmem:[#allocation8_spill] sm:$0xff] %v10540_v45  ;;  %v10545_v46 = vld [vmem:[%s12672_s0 + $0x60] sm:$0xff] }
  0x51   :  { %8473 = vmatmul.mubr.msk.f32.gmra.mrb[38].mxu1 %vm156_vm1, %v7129_v47  ;;  %8865 = vmatmul.mubr.msk.f32.gmra.mrb[38].mxu0 %vm156_vm1, %v7131_v49  ;;  %v10550_v47 = vld [vmem:[%s12672_s0 + $0x16a] sm:$0xff] }
  0x52   :  { %8475 = vmatprep.mubr.msk.f32.mxu1 %vm156_vm1, %v7130_v48  ;;  %8867 = vmatprep.mubr.msk.f32.mxu0 %vm156_vm1, %v7132_v50  ;;  %12727 = vst [vmem:[#allocation9_spill] sm:$0xff] %v10550_v47  ;;  %v10563_v48 = vld [vmem:[%s12672_s0 + $0x68] sm:$0xff] }
  0x55   :  { %8476 = vmatmul.mubr.msk.f32.gmra.mrb[40].mxu1 %vm156_vm1, %v7131_v49  ;;  %8868 = vmatmul.mubr.msk.f32.gmra.mrb[40].mxu0 %vm156_vm1, %v7133_v51  ;;  %v10568_v49 = vld [vmem:[%s12672_s0 + $0x172] sm:$0xff] }
  0x56   :  { %8478 = vmatprep.mubr.msk.f32.mxu1 %vm156_vm1, %v7132_v50  ;;  %8870 = vmatprep.mubr.msk.f32.mxu0 %vm156_vm1, %v7134_v52  ;;  %12728 = vst [vmem:[#allocation10_spill] sm:$0xff] %v10568_v49  ;;  %v10573_v50 = vld [vmem:[%s12672_s0 + $0x78] sm:$0xff] }
  0x59   :  { %8479 = vmatmul.mubr.msk.f32.gmra.mrb[42].mxu1 %vm156_vm1, %v7133_v51  ;;  %8871 = vmatmul.mubr.msk.f32.gmra.mrb[42].mxu0 %vm156_vm1, %v7135_v53  ;;  %v7251_v51 = vld [vmem:[%s12672_s0 + $0x182] sm:$0xff] }
  0x5a   :  { %8481 = vmatprep.mubr.msk.f32.mxu1 %vm156_vm1, %v7134_v52  ;;  %8905 = vmatprep.mubr.msk.f32.mxu0 %vm156_vm1, %v10222_v54  ;;  %v10588_v52 = vld [vmem:[%s12672_s0 + $0x80] sm:$0xff] }
  0x5d   :  { %8482 = vmatmul.mubr.msk.f32.gmra.mrb[44].mxu1 %vm156_vm1, %v7135_v53  ;;  %8906 = vmatmul.mubr.msk.f32.vlgmr.msra.gmra.mrb[0].mxu0 %vm156_vm1, %v10232_v55  ;;  %v7252_v53 = vld [vmem:[%s12672_s0 + $0x18a] sm:$0xff] }
  0x5e   :  { %9002 = vmatpush3.msk.msra.mxu0 %vm349_vm0, %v10035_v17  ;;  %8484 = vmatprep.mubr.msk.f32.mxu1 %vm156_vm1, %v137_v56  ;;  %v10373_v17 = vld [vmem:[%s12672_s0 + $0xb2] sm:$0xff] }
  0x5f   :  { %8908 = vmatprep.mubr.msk.f32.mxu0 %vm156_vm1, %v10240_v57  ;;  %9099 = vmatprep.subr.msk.mxu0 %vm349_vm0, %v10248_v58  ;;  %v10596_v56 = vld [vmem:[%s12672_s0 + $0x90] sm:$0xff] }
  0x61   :  { %8485 = vmatmul.mubr.msk.f32.gmra.mrb[46].mxu1 %vm156_vm1, %v138_v59  ;;  %8909 = vmatmul.mubr.msk.f32.gmra.mrb[2].mxu0 %vm156_vm1, %v10259_v60  ;;  %v10601_v59 = vld [vmem:[%s12672_s0 + $0x1ca] sm:$0xff] }
  0x62   :  { %8487 = vmatprep.mubr.msk.f32.mxu1 %vm156_vm1, %v139_v61  ;;  %8911 = vmatprep.mubr.msk.f32.mxu0 %vm156_vm1, %v10269_v62  ;;  %12729 = vst [vmem:[#allocation11_spill] sm:$0xff] %v10601_v59  ;;  %v10613_v61 = vld [vmem:[%s12672_s0 + $0x98] sm:$0xff] }
  0x65   :  { %8488 = vmatmul.mubr.msk.f32.gmra.mrb[48].mxu1 %vm156_vm1, %v140_v63  ;;  %8912 = vmatmul.mubr.msk.f32.gmra.mrb[4].mxu0 %vm156_vm1, %v10285_v0  ;;  %v10618_v63 = vld [vmem:[%s12672_s0 + $0x1d2] sm:$0xff] }
  0x66   :  { %8490 = vmatprep.mubr.msk.f32.mxu1 %vm156_vm1, %v141_v2  ;;  %8914 = vmatprep.mubr.msk.f32.mxu0 %vm156_vm1, %v10293_v3  ;;  %12730 = vst [vmem:[#allocation12_spill] sm:$0xff] %v10618_v63  ;;  %v10623_v2 = vld [vmem:[%s12672_s0 + $0xa8] sm:$0xff] }
  0x69   :  { %8491 = vmatmul.mubr.msk.f32.gmra.mrb[50].mxu1 %vm156_vm1, %v142_v4  ;;  %8915 = vmatmul.mubr.msk.f32.gmra.mrb[6].mxu0 %vm156_vm1, %v10307_v5  ;;  %v10628_v4 = vld [vmem:[%s12672_s0 + $0x1e2] sm:$0xff] }
  0x6a   :  { %8493 = vmatprep.mubr.msk.f32.mxu1 %vm156_vm1, %v143_v6  ;;  %8917 = vmatprep.mubr.msk.f32.mxu0 %vm156_vm1, %v10315_v7  ;;  %12731 = vst [vmem:[#allocation13_spill] sm:$0xff] %v10628_v4  ;;  %v10641_v6 = vld [vmem:[%s12672_s0 + $0xb0] sm:$0xff] }
  0x6d   :  { %8494 = vmatmul.mubr.msk.f32.gmra.mrb[52].mxu1 %vm156_vm1, %v144_v8  ;;  %8918 = vmatmul.mubr.msk.f32.gmra.mrb[8].mxu0 %vm156_vm1, %v10329_v9  ;;  %v10646_v8 = vld [vmem:[%s12672_s0 + $0x1ea] sm:$0xff] }
  0x6e   :  { %8496 = vmatprep.mubr.msk.f32.mxu1 %vm156_vm1, %v145_v10  ;;  %8920 = vmatprep.mubr.msk.f32.mxu0 %vm156_vm1, %v10337_v11  ;;  %12732 = vst [vmem:[#allocation14_spill] sm:$0xff] %v10646_v8  ;;  %v10651_v10 = vld [vmem:[%s12672_s0 + $0xc0] sm:$0xff] }
  0x71   :  { %8497 = vmatmul.mubr.msk.f32.gmra.mrb[54].mxu1 %vm156_vm1, %v146_v12  ;;  %8921 = vmatmul.mubr.msk.f32.gmra.mrb[10].mxu0 %vm156_vm1, %v10351_v13  ;;  %v10656_v12 = vld [vmem:[%s12672_s0 + $0x1fa] sm:$0xff] }
  0x72   :  { %8499 = vmatprep.mubr.msk.f32.mxu1 %vm156_vm1, %v147_v14  ;;  %8923 = vmatprep.mubr.msk.f32.mxu0 %vm156_vm1, %v10359_v15  ;;  %12733 = vst [vmem:[#allocation15_spill] sm:$0xff] %v10656_v12  ;;  %v10669_v14 = vld [vmem:[%s12672_s0 + $0xc8] sm:$0xff] }
  0x75   :  { %8500 = vmatmul.mubr.msk.f32.gmra.mrb[56].mxu1 %vm156_vm1, %v148_v16  ;;  %8924 = vmatmul.mubr.msk.f32.gmra.mrb[12].mxu0 %vm156_vm1, %v10373_v17  ;;  %v10674_v16 = vld [vmem:[%s12672_s0 + $0x202] sm:$0xff] }
  0x76   :  { %8502 = vmatprep.mubr.msk.f32.mxu1 %vm156_vm1, %v149_v18  ;;  %8926 = vmatprep.mubr.msk.f32.mxu0 %vm156_vm1, %v10381_v19  ;;  %12734 = vst [vmem:[#allocation16_spill] sm:$0xff] %v10674_v16  ;;  %v10679_v18 = vld [vmem:[%s12672_s0 + $0xd8] sm:$0xff] }
  0x79   :  { %8503 = vmatmul.mubr.msk.f32.gmra.mrb[58].mxu1 %vm156_vm1, %v150_v20  ;;  %8927 = vmatmul.mubr.msk.f32.gmra.mrb[14].mxu0 %vm156_vm1, %v10395_v21  ;;  %v10684_v20 = vld [vmem:[%s12672_s0 + $0x212] sm:$0xff] }
  0x7a   :  { %8505 = vmatprep.mubr.msk.f32.mxu1 %vm156_vm1, %v151_v22  ;;  %8929 = vmatprep.mubr.msk.f32.mxu0 %vm156_vm1, %v10403_v23  ;;  %12735 = vst [vmem:[#allocation17_spill] sm:$0xff] %v10684_v20  ;;  %v10697_v22 = vld [vmem:[%s12672_s0 + $0xe0] sm:$0xff] }
  0x7d   :  { %8506 = vmatmul.mubr.msk.f32.gmra.mrb[60].mxu1 %vm156_vm1, %v152_v24  ;;  %8930 = vmatmul.mubr.msk.f32.gmra.mrb[16].mxu0 %vm156_vm1, %v10417_v25  ;;  %v10702_v24 = vld [vmem:[%s12672_s0 + $0x21a] sm:$0xff] }
  0x7e   :  { %8508 = vmatprep.mubr.msk.f32.mxu1 %vm156_vm1, %v153_v26  ;;  %8932 = vmatprep.mubr.msk.f32.mxu0 %vm156_vm1, %v10425_v27  ;;  %12736 = vst [vmem:[#allocation18_spill] sm:$0xff] %v10702_v24  ;;  %v10707_v26 = vld [vmem:[%s12672_s0 + $0xf0] sm:$0xff] }
  0x81   :  { %8509 = vmatmul.mubr.msk.f32.gmra.mrb[62].mxu1 %vm156_vm1, %v154_v28  ;;  %8933 = vmatmul.mubr.msk.f32.gmra.mrb[18].mxu0 %vm156_vm1, %v10439_v29  ;;  %v10712_v28 = vld [vmem:[%s12672_s0 + $0x22a] sm:$0xff] }
  0x82   :  { %8513 = vmatprep.mubr.msk.f32.mxu1 %vm156_vm1, %v26_v30  ;;  %8935 = vmatprep.mubr.msk.f32.mxu0 %vm156_vm1, %v10447_v31  ;;  %12737 = vst [vmem:[#allocation19_spill] sm:$0xff] %v10712_v28  ;;  %v10725_v30 = vld [vmem:[%s12672_s0 + $0xf8] sm:$0xff] }
  0x85   :  { %8514 = vmatmul.mubr.msk.f32.vlgmr.msra.gmra.mrb[0].mxu1 %vm156_vm1, %v27_v32  ;;  %8936 = vmatmul.mubr.msk.f32.gmra.mrb[20].mxu0 %vm156_vm1, %v10461_v33  ;;  %v10730_v32 = vld [vmem:[%s12672_s0 + $0x232] sm:$0xff]  ;;  %v11033_v33 = vld [vmem:[%s12672_s0 + $0x240] sm:$0xff] }
  0x86   :  { %8516 = vmatprep.mubr.msk.f32.mxu1 %vm156_vm1, %v28_v35  ;;  %8938 = vmatprep.mubr.msk.f32.mxu0 %vm156_vm1, %v10469_v36  ;;  %12738 = vst [vmem:[#allocation20_spill] sm:$0xff] %v10730_v32  ;;  %v10735_v35 = vld [vmem:[%s12672_s0 + $0x108] sm:$0xff]  ;;  %v7284_v36 = vld [vmem:[%s12672_s0 + $0x33a] sm:$0xff] }
  0x87   :  { %8610 = vmatpush3.msk.msra.mxu1 %vm349_vm0, %v10124_v34  ;;  %v10512_v34 = vld [vmem:[%s12672_s0 + $0x142] sm:$0xff] }
  0x88   :  { %12724 = vst [vmem:[#allocation6_spill] sm:$0xff] %v10512_v34 }
  0x89   :  { %8517 = vmatmul.mubr.msk.f32.gmra.mrb[2].mxu1 %vm156_vm1, %v29_v37  ;;  %8939 = vmatmul.mubr.msk.f32.gmra.mrb[22].mxu0 %vm156_vm1, %v10483_v38  ;;  %v10740_v37 = vld [vmem:[%s12672_s0 + $0x242] sm:$0xff]  ;;  %v7283_v38 = vld [vmem:[%s12672_s0 + $0x332] sm:$0xff] }
  0x8a   :  { %8519 = vmatprep.mubr.msk.f32.mxu1 %vm156_vm1, %v10488_v39  ;;  %8941 = vmatprep.mubr.msk.f32.mxu0 %vm156_vm1, %v10493_v40  ;;  %12739 = vst [vmem:[#allocation21_spill] sm:$0xff] %v10740_v37  ;;  %v11005_v40 = vld [vmem:[%s12672_s0 + $0x322] sm:$0xff] }
  0x8b   :  { %12758 = vst [vmem:[#allocation40_spill] sm:$0xff] %v11005_v40 }
  0x8d   :  { %8520 = vmatmul.mubr.msk.f32.gmra.mrb[4].mxu1 %vm156_vm1, %v10507_v41  ;;  %8942 = vmatmul.mubr.msk.f32.gmra.mrb[24].mxu0 %vm156_vm1, %v10512_v34  ;;  %v10987_v34 = vld [vmem:[%s12672_s0 + $0x31a] sm:$0xff] }
  0x8e   :  { %8522 = vmatprep.mubr.msk.f32.mxu1 %vm156_vm1, %v10517_v42  ;;  %8944 = vmatprep.mubr.msk.f32.mxu0 %vm156_vm1, %v10522_v43  ;;  %v10977_v43 = vld [vmem:[%s12672_s0 + $0x30a] sm:$0xff]  ;;  %12757 = vst [vmem:[#allocation39_spill] sm:$0xff] %v10987_v34 }
  0x8f   :  { %12756 = vst [vmem:[#allocation38_spill] sm:$0xff] %v10977_v43 }
  0x91   :  { %8523 = vmatmul.mubr.msk.f32.gmra.mrb[6].mxu1 %vm156_vm1, %v10535_v44  ;;  %8945 = vmatmul.mubr.msk.f32.gmra.mrb[26].mxu0 %vm156_vm1, %v10540_v45  ;;  %v60_v45 = vld [vmem:[%s12672_s0 + $0x1c8] sm:$0xff] }
  0x92   :  { %8525 = vmatprep.mubr.msk.f32.mxu1 %vm156_vm1, %v10545_v46  ;;  %8947 = vmatprep.mubr.msk.f32.mxu0 %vm156_vm1, %v10550_v47  ;;  %v10900_v47 = vld [vmem:[%s12672_s0 + $0x2c2] sm:$0xff] }
  0x93   :  { %12750 = vst [vmem:[#allocation32_spill] sm:$0xff] %v10900_v47 }
  0x95   :  { %8526 = vmatmul.mubr.msk.f32.gmra.mrb[8].mxu1 %vm156_vm1, %v10563_v48  ;;  %8948 = vmatmul.mubr.msk.f32.gmra.mrb[28].mxu0 %vm156_vm1, %v10568_v49  ;;  %v10885_v49 = vld [vmem:[%s12672_s0 + $0x2ba] sm:$0xff] }
  0x96   :  { %8528 = vmatprep.mubr.msk.f32.mxu1 %vm156_vm1, %v10573_v50  ;;  %8950 = vmatprep.mubr.msk.f32.mxu0 %vm156_vm1, %v7251_v51  ;;  %v10753_v51 = vld [vmem:[%s12672_s0 + $0x110] sm:$0xff]  ;;  %12749 = vst [vmem:[#allocation31_spill] sm:$0xff] %v10885_v49 }
  0x99   :  { %8529 = vmatmul.mubr.msk.f32.gmra.mrb[10].mxu1 %vm156_vm1, %v10588_v52  ;;  %8951 = vmatmul.mubr.msk.f32.gmra.mrb[30].mxu0 %vm156_vm1, %v7252_v53  ;;  %v10758_v53 = vld [vmem:[%s12672_s0 + $0x24a] sm:$0xff] }
  0x9a   :  { %8531 = vmatprep.mubr.msk.f32.mxu1 %vm156_vm1, %v10596_v56  ;;  %8953 = vmatprep.mubr.msk.f32.mxu0 %vm156_vm1, %v10601_v59  ;;  %12740 = vst [vmem:[#allocation22_spill] sm:$0xff] %v10758_v53  ;;  %v10877_v59 = vld [vmem:[%s12672_s0 + $0x2aa] sm:$0xff] }
  0x9b   :  { %12748 = vst [vmem:[#allocation30_spill] sm:$0xff] %v10877_v59 }
  0x9d   :  { %8532 = vmatmul.mubr.msk.f32.gmra.mrb[12].mxu1 %vm156_vm1, %v10613_v61  ;;  %8954 = vmatmul.mubr.msk.f32.gmra.mrb[32].mxu0 %vm156_vm1, %v10618_v63  ;;  %v10859_v63 = vld [vmem:[%s12672_s0 + $0x2a2] sm:$0xff] }
  0x9e   :  { %8534 = vmatprep.mubr.msk.f32.mxu1 %vm156_vm1, %v10623_v2  ;;  %8956 = vmatprep.mubr.msk.f32.mxu0 %vm156_vm1, %v10628_v4  ;;  %v10849_v4 = vld [vmem:[%s12672_s0 + $0x292] sm:$0xff]  ;;  %12747 = vst [vmem:[#allocation29_spill] sm:$0xff] %v10859_v63 }
  0x9f   :  { %12746 = vst [vmem:[#allocation28_spill] sm:$0xff] %v10849_v4 }
  0xa1   :  { %8535 = vmatmul.mubr.msk.f32.gmra.mrb[14].mxu1 %vm156_vm1, %v10641_v6  ;;  %8957 = vmatmul.mubr.msk.f32.gmra.mrb[34].mxu0 %vm156_vm1, %v10646_v8  ;;  %v10829_v8 = vld [vmem:[%s12672_s0 + $0x28a] sm:$0xff] }
  0xa2   :  { %8537 = vmatprep.mubr.msk.f32.mxu1 %vm156_vm1, %v10651_v10  ;;  %8959 = vmatprep.mubr.msk.f32.mxu0 %vm156_vm1, %v10656_v12  ;;  %v10824_v12 = vld [vmem:[%s12672_s0 + $0x150] sm:$0xff]  ;;  %12745 = vst [vmem:[#allocation27_spill] sm:$0xff] %v10829_v8 }
  0xa5   :  { %8538 = vmatmul.mubr.msk.f32.gmra.mrb[16].mxu1 %vm156_vm1, %v10669_v14  ;;  %8960 = vmatmul.mubr.msk.f32.gmra.mrb[36].mxu0 %vm156_vm1, %v10674_v16  ;;  %v10814_v16 = vld [vmem:[%s12672_s0 + $0x140] sm:$0xff] }
  0xa6   :  { %8540 = vmatprep.mubr.msk.f32.mxu1 %vm156_vm1, %v10679_v18  ;;  %8962 = vmatprep.mubr.msk.f32.mxu0 %vm156_vm1, %v10684_v20  ;;  %v10796_v20 = vld [vmem:[%s12672_s0 + $0x272] sm:$0xff] }
  0xa7   :  { %12743 = vst [vmem:[#allocation25_spill] sm:$0xff] %v10796_v20 }
  0xa9   :  { %8541 = vmatmul.mubr.msk.f32.gmra.mrb[18].mxu1 %vm156_vm1, %v10697_v22  ;;  %8963 = vmatmul.mubr.msk.f32.gmra.mrb[38].mxu0 %vm156_vm1, %v10702_v24  ;;  %v10786_v24 = vld [vmem:[%s12672_s0 + $0x262] sm:$0xff] }
  0xaa   :  { %8543 = vmatprep.mubr.msk.f32.mxu1 %vm156_vm1, %v10707_v26  ;;  %8965 = vmatprep.mubr.msk.f32.mxu0 %vm156_vm1, %v10712_v28  ;;  %v10768_v28 = vld [vmem:[%s12672_s0 + $0x25a] sm:$0xff]  ;;  %12742 = vst [vmem:[#allocation24_spill] sm:$0xff] %v10786_v24 }
  0xab   :  { %12741 = vst [vmem:[#allocation23_spill] sm:$0xff] %v10768_v28 }
  0xad   :  { %8544 = vmatmul.mubr.msk.f32.gmra.mrb[20].mxu1 %vm156_vm1, %v10725_v30  ;;  %8966 = vmatmul.mubr.msk.f32.gmra.mrb[40].mxu0 %vm156_vm1, %v10730_v32  ;;  %v10763_v32 = vld [vmem:[%s12672_s0 + $0x120] sm:$0xff] }
  0xae   :  { %8546 = vmatprep.mubr.msk.f32.mxu1 %vm156_vm1, %v10735_v35  ;;  %8968 = vmatprep.mubr.msk.f32.mxu0 %vm156_vm1, %v10740_v37  ;;  %v10781_v37 = vld [vmem:[%s12672_s0 + $0x128] sm:$0xff] }
  0xb1   :  { %8547 = vmatmul.mubr.msk.f32.gmra.mrb[22].mxu1 %vm156_vm1, %v10753_v51  ;;  %8969 = vmatmul.mubr.msk.f32.gmra.mrb[42].mxu0 %vm156_vm1, %v10758_v53  ;;  %v10791_v53 = vld [vmem:[%s12672_s0 + $0x138] sm:$0xff] }
  0xb2   :  { %8549 = vmatprep.mubr.msk.f32.mxu1 %vm156_vm1, %v10763_v32  ;;  %8971 = vmatprep.mubr.msk.f32.mxu0 %vm156_vm1, %v10768_v28  ;;  %v10805_v28 = vld [vmem:[%s12671_s1 + $0x9] sm:$0x7] }
  0xb3   :  { %8707 = vmatprep.subr.msk.mxu1 %vm349_vm0, %v10805_v28 }
  0xb5   :  { %8550 = vmatmul.mubr.msk.f32.gmra.mrb[24].mxu1 %vm156_vm1, %v10781_v37  ;;  %8972 = vmatmul.mubr.msk.f32.gmra.mrb[44].mxu0 %vm156_vm1, %v10786_v24  ;;  %v10819_v24 = vld [vmem:[%s12672_s0 + $0x27a] sm:$0xff] }
  0xb6   :  { %8552 = vmatprep.mubr.msk.f32.mxu1 %vm156_vm1, %v10791_v53  ;;  %8974 = vmatprep.mubr.msk.f32.mxu0 %vm156_vm1, %v10796_v20  ;;  %12744 = vst [vmem:[#allocation26_spill] sm:$0xff] %v10819_v24  ;;  %v10844_v20 = vld [vmem:[%s12672_s0 + $0x158] sm:$0xff] }
  0xb9   :  { %8553 = vmatmul.mubr.msk.f32.gmra.mrb[26].mxu1 %vm156_vm1, %v10814_v16  ;;  %8975 = vmatmul.mubr.msk.f32.gmra.mrb[46].mxu0 %vm156_vm1, %v10819_v24  ;;  %v10854_v24 = vld [vmem:[%s12672_s0 + $0x168] sm:$0xff] }
  0xba   :  { %8555 = vmatprep.mubr.msk.f32.mxu1 %vm156_vm1, %v10824_v12  ;;  %8977 = vmatprep.mubr.msk.f32.mxu0 %vm156_vm1, %v10829_v8  ;;  %v10872_v8 = vld [vmem:[%s12672_s0 + $0x170] sm:$0xff] }
  0xbd   :  { %8556 = vmatmul.mubr.msk.f32.gmra.mrb[28].mxu1 %vm156_vm1, %v10844_v20  ;;  %8978 = vmatmul.mubr.msk.f32.gmra.mrb[48].mxu0 %vm156_vm1, %v10849_v4  ;;  %v58_v4 = vld [vmem:[%s12672_s0 + $0x1b0] sm:$0xff] }
  0xbe   :  { %8558 = vmatprep.mubr.msk.f32.mxu1 %vm156_vm1, %v10854_v24  ;;  %8980 = vmatprep.mubr.msk.f32.mxu0 %vm156_vm1, %v10859_v63  ;;  %v59_v63 = vld [vmem:[%s12672_s0 + $0x1b8] sm:$0xff] }
  0xc1   :  { %8559 = vmatmul.mubr.msk.f32.gmra.mrb[30].mxu1 %vm156_vm1, %v10872_v8  ;;  %8981 = vmatmul.mubr.msk.f32.gmra.mrb[50].mxu0 %vm156_vm1, %v10877_v59  ;;  %v10922_v59 = vld [vmem:[%s12672_s0 + $0x2da] sm:$0xff] }
  0xc2   :  { %8561 = vmatprep.mubr.msk.f32.mxu1 %vm156_vm1, %v58_v4  ;;  %8983 = vmatprep.mubr.msk.f32.mxu0 %vm156_vm1, %v10885_v49  ;;  %v10908_v4 = vld [vmem:[%s12672_s0 + $0x2d2] sm:$0xff]  ;;  %12752 = vst [vmem:[#allocation34_spill] sm:$0xff] %v10922_v59 }
  0xc3   :  { %12751 = vst [vmem:[#allocation33_spill] sm:$0xff] %v10908_v4  ;;  %v61_v49 = vld [vmem:[%s12672_s0 + $0x1d0] sm:$0xff] }
  0xc5   :  { %8562 = vmatmul.mubr.msk.f32.gmra.mrb[32].mxu1 %vm156_vm1, %v59_v63  ;;  %8984 = vmatmul.mubr.msk.f32.gmra.mrb[52].mxu0 %vm156_vm1, %v10900_v47  ;;  %v10927_v63 = vld [vmem:[%s12672_s0 + $0x1e0] sm:$0xff]  ;;  %v10949_v47 = vld [vmem:[%s12672_s0 + $0x2f2] sm:$0xff] }
  0xc6   :  { %8564 = vmatprep.mubr.msk.f32.mxu1 %vm156_vm1, %v60_v45  ;;  %8986 = vmatprep.mubr.msk.f32.mxu0 %vm156_vm1, %v10908_v4  ;;  %v10932_v45 = vld [vmem:[%s12672_s0 + $0x2ea] sm:$0xff]  ;;  %12754 = vst [vmem:[#allocation36_spill] sm:$0xff] %v10949_v47 }
  0xc7   :  { %12753 = vst [vmem:[#allocation35_spill] sm:$0xff] %v10932_v45  ;;  %v10944_v4 = vld [vmem:[%s12672_s0 + $0x1e8] sm:$0xff] }
  0xc9   :  { %8565 = vmatmul.mubr.msk.f32.gmra.mrb[34].mxu1 %vm156_vm1, %v61_v49  ;;  %8987 = vmatmul.mubr.msk.f32.gmra.mrb[54].mxu0 %vm156_vm1, %v10922_v59  ;;  %v10954_v49 = vld [vmem:[%s12672_s0 + $0x1f8] sm:$0xff]  ;;  %v10959_v59 = vld [vmem:[%s12672_s0 + $0x302] sm:$0xff] }
  0xca   :  { %8567 = vmatprep.mubr.msk.f32.mxu1 %vm156_vm1, %v10927_v63  ;;  %8989 = vmatprep.mubr.msk.f32.mxu0 %vm156_vm1, %v10932_v45  ;;  %12755 = vst [vmem:[#allocation37_spill] sm:$0xff] %v10959_v59  ;;  %v10972_v45 = vld [vmem:[%s12672_s0 + $0x200] sm:$0xff] }
  0xcd   :  { %8568 = vmatmul.mubr.msk.f32.gmra.mrb[36].mxu1 %vm156_vm1, %v10944_v4  ;;  %8990 = vmatmul.mubr.msk.f32.gmra.mrb[56].mxu0 %vm156_vm1, %v10949_v47  ;;  %v10982_v47 = vld [vmem:[%s12672_s0 + $0x210] sm:$0xff] }
  0xce   :  { %8570 = vmatprep.mubr.msk.f32.mxu1 %vm156_vm1, %v10954_v49  ;;  %8992 = vmatprep.mubr.msk.f32.mxu0 %vm156_vm1, %v10959_v59  ;;  %v11000_v59 = vld [vmem:[%s12672_s0 + $0x218] sm:$0xff] }
  0xd1   :  { %8571 = vmatmul.mubr.msk.f32.gmra.mrb[38].mxu1 %vm156_vm1, %v10972_v45  ;;  %8993 = vmatmul.mubr.msk.f32.gmra.mrb[58].mxu0 %vm156_vm1, %v10977_v43  ;;  %v11010_v43 = vld [vmem:[%s12672_s0 + $0x228] sm:$0xff] }
  0xd2   :  { %8573 = vmatprep.mubr.msk.f32.mxu1 %vm156_vm1, %v10982_v47  ;;  %8995 = vmatprep.mubr.msk.f32.mxu0 %vm156_vm1, %v10987_v34  ;;  %v11025_v34 = vld [vmem:[%s12672_s0 + $0x230] sm:$0xff] }
  0xd5   :  { %8574 = vmatmul.mubr.msk.f32.gmra.mrb[40].mxu1 %vm156_vm1, %v11000_v59  ;;  %8996 = vmatmul.mubr.msk.f32.gmra.mrb[60].mxu0 %vm156_vm1, %v11005_v40  ;;  %v11050_v40 = vld [vmem:[%s12672_s0 + $0x258] sm:$0xff] }
  0xd6   :  { %8576 = vmatprep.mubr.msk.f32.mxu1 %vm156_vm1, %v11010_v43  ;;  %8998 = vmatprep.mubr.msk.f32.mxu0 %vm156_vm1, %v7283_v38  ;;  %v11045_v38 = vld [vmem:[%s12672_s0 + $0x248] sm:$0xff] }
  0xd9   :  { %8577 = vmatmul.mubr.msk.f32.gmra.mrb[42].mxu1 %vm156_vm1, %v11025_v34  ;;  %8999 = vmatmul.mubr.msk.f32.gmra.mrb[62].mxu0 %vm156_vm1, %v7284_v36  ;;  %v11059_v36 = vld [vmem:[%s12671_s1 + $0x18] sm:$0x7] }
  0xda   :  { %8579 = vmatprep.mubr.msk.f32.mxu1 %vm156_vm1, %v11033_v33  ;;  %9003 = vmatprep.mubr.msk.f32.mxu0 %vm156_vm1, %v10488_v39  ;;  %v11068_v39 = vld [vmem:[%s12672_s0 + $0x260] sm:$0xff] }
  0xdd   :  { %8580 = vmatmul.mubr.msk.f32.gmra.mrb[44].mxu1 %vm156_vm1, %v11045_v38  ;;  %9004 = vmatmul.mubr.msk.f32.vlgmr.msra.gmra.mrb[0].mxu0 %vm156_vm1, %v10507_v41  ;;  %v11075_v41 = vld [vmem:[%s12672_s0 + $0x270] sm:$0xff] }
  0xde   :  { %9100 = vmatpush3.msk.msra.mxu0 %vm349_vm0, %v10248_v58  ;;  %8582 = vmatprep.mubr.msk.f32.mxu1 %vm156_vm1, %v11050_v40  ;;  %v11090_v58 = vld [vmem:[%s12672_s0 + $0x278] sm:$0xff] }
  0xdf   :  { %9006 = vmatprep.mubr.msk.f32.mxu0 %vm156_vm1, %v10517_v42  ;;  %9197 = vmatprep.subr.msk.mxu0 %vm349_vm0, %v11059_v36  ;;  %v11095_v42 = vld [vmem:[%s12672_s0 + $0x288] sm:$0xff] }
  0xe1   :  { %8583 = vmatmul.mubr.msk.f32.gmra.mrb[46].mxu1 %vm156_vm1, %v11068_v39  ;;  %9007 = vmatmul.mubr.msk.f32.gmra.mrb[2].mxu0 %vm156_vm1, %v10535_v44  ;;  %v11108_v44 = vld [vmem:[%s12672_s0 + $0x290] sm:$0xff] }
  0xe2   :  { %8585 = vmatprep.mubr.msk.f32.mxu1 %vm156_vm1, %v11075_v41  ;;  %9009 = vmatprep.mubr.msk.f32.mxu0 %vm156_vm1, %v10545_v46  ;;  %v11113_v46 = vld [vmem:[%s12672_s0 + $0x2a0] sm:$0xff] }
  0xe5   :  { %8586 = vmatmul.mubr.msk.f32.gmra.mrb[48].mxu1 %vm156_vm1, %v11090_v58  ;;  %9010 = vmatmul.mubr.msk.f32.gmra.mrb[4].mxu0 %vm156_vm1, %v10563_v48  ;;  %v11126_v48 = vld [vmem:[%s12672_s0 + $0x2a8] sm:$0xff] }
  0xe6   :  { %8588 = vmatprep.mubr.msk.f32.mxu1 %vm156_vm1, %v11095_v42  ;;  %9012 = vmatprep.mubr.msk.f32.mxu0 %vm156_vm1, %v10573_v50  ;;  %v11131_v50 = vld [vmem:[%s12672_s0 + $0x2b8] sm:$0xff] }
  0xe9   :  { %8589 = vmatmul.mubr.msk.f32.gmra.mrb[50].mxu1 %vm156_vm1, %v11108_v44  ;;  %9013 = vmatmul.mubr.msk.f32.gmra.mrb[6].mxu0 %vm156_vm1, %v10588_v52  ;;  %v11144_v52 = vld [vmem:[%s12672_s0 + $0x2c0] sm:$0xff] }
  0xea   :  { %8591 = vmatprep.mubr.msk.f32.mxu1 %vm156_vm1, %v11113_v46  ;;  %9015 = vmatprep.mubr.msk.f32.mxu0 %vm156_vm1, %v10596_v56  ;;  %v11149_v56 = vld [vmem:[%s12672_s0 + $0x2d0] sm:$0xff] }
  0xed   :  { %8592 = vmatmul.mubr.msk.f32.gmra.mrb[52].mxu1 %vm156_vm1, %v11126_v48  ;;  %9016 = vmatmul.mubr.msk.f32.gmra.mrb[8].mxu0 %vm156_vm1, %v10613_v61  ;;  %v11162_v61 = vld [vmem:[%s12672_s0 + $0x2d8] sm:$0xff] }
  0xee   :  { %8594 = vmatprep.mubr.msk.f32.mxu1 %vm156_vm1, %v11131_v50  ;;  %9018 = vmatprep.mubr.msk.f32.mxu0 %vm156_vm1, %v10623_v2  ;;  %v11167_v2 = vld [vmem:[%s12672_s0 + $0x2e8] sm:$0xff] }
  0xf1   :  { %8595 = vmatmul.mubr.msk.f32.gmra.mrb[54].mxu1 %vm156_vm1, %v11144_v52  ;;  %9019 = vmatmul.mubr.msk.f32.gmra.mrb[10].mxu0 %vm156_vm1, %v10641_v6  ;;  %v11180_v6 = vld [vmem:[%s12672_s0 + $0x2f0] sm:$0xff] }
  0xf2   :  { %8597 = vmatprep.mubr.msk.f32.mxu1 %vm156_vm1, %v11149_v56  ;;  %9021 = vmatprep.mubr.msk.f32.mxu0 %vm156_vm1, %v10651_v10  ;;  %v11185_v10 = vld [vmem:[%s12672_s0 + $0x300] sm:$0xff] }
  0xf5   :  { %8598 = vmatmul.mubr.msk.f32.gmra.mrb[56].mxu1 %vm156_vm1, %v11162_v61  ;;  %9022 = vmatmul.mubr.msk.f32.gmra.mrb[12].mxu0 %vm156_vm1, %v10669_v14  ;;  %v11198_v14 = vld [vmem:[%s12672_s0 + $0x308] sm:$0xff] }
  0xf6   :  { %8600 = vmatprep.mubr.msk.f32.mxu1 %vm156_vm1, %v11167_v2  ;;  %9024 = vmatprep.mubr.msk.f32.mxu0 %vm156_vm1, %v10679_v18  ;;  %v11203_v18 = vld [vmem:[%s12672_s0 + $0x318] sm:$0xff] }
  0xf9   :  { %8601 = vmatmul.mubr.msk.f32.gmra.mrb[58].mxu1 %vm156_vm1, %v11180_v6  ;;  %9025 = vmatmul.mubr.msk.f32.gmra.mrb[14].mxu0 %vm156_vm1, %v10697_v22  ;;  %v11216_v22 = vld [vmem:[%s12672_s0 + $0x320] sm:$0xff] }
  0xfa   :  { %8603 = vmatprep.mubr.msk.f32.mxu1 %vm156_vm1, %v11185_v10  ;;  %9027 = vmatprep.mubr.msk.f32.mxu0 %vm156_vm1, %v10707_v26  ;;  %v1318_v26 = vld [vmem:[%s12672_s0 + $0x2] sm:$0xff] }
  0xfd   :  { %8604 = vmatmul.mubr.msk.f32.gmra.mrb[60].mxu1 %vm156_vm1, %v11198_v14  ;;  %9028 = vmatmul.mubr.msk.f32.gmra.mrb[16].mxu0 %vm156_vm1, %v10725_v30  ;;  %v1319_v30 = vld [vmem:[%s12672_s0 + $0xa] sm:$0xff] }
  0xfe   :  { %8606 = vmatprep.mubr.msk.f32.mxu1 %vm156_vm1, %v11203_v18  ;;  %9030 = vmatprep.mubr.msk.f32.mxu0 %vm156_vm1, %v10735_v35  ;;  %v12780_v35 = vld [vmem:[#allocation23_spill] sm:$0xff] }
 0x101   :  { %8607 = vmatmul.mubr.msk.f32.gmra.mrb[62].mxu1 %vm156_vm1, %v11216_v22  ;;  %9031 = vmatmul.mubr.msk.f32.gmra.mrb[18].mxu0 %vm156_vm1, %v10753_v51  ;;  %v7483_v51 = vld [vmem:[%s12672_s0 + $0x61] sm:$0xff] }
 0x102   :  { %8611 = vmatprep.mubr.msk.f32.mxu1 %vm156_vm1, %v1318_v26  ;;  %9033 = vmatprep.mubr.msk.f32.mxu0 %vm156_vm1, %v10763_v32  ;;  %v12779_v32 = vld [vmem:[#allocation22_spill] sm:$0xff]  ;;  %v7487_v26 = vld [vmem:[%s12672_s0 + $0x91] sm:$0xff] }
 0x105   :  { %8612 = vmatmul.mubr.msk.f32.vlgmr.msra.gmra.mrb[0].mxu1 %vm156_vm1, %v1319_v30  ;;  %9034 = vmatmul.mubr.msk.f32.gmra.mrb[20].mxu0 %vm156_vm1, %v10781_v37  ;;  %v7482_v37 = vld [vmem:[%s12672_s0 + $0x51] sm:$0xff] }
 0x106   :  { %8614 = vmatprep.mubr.msk.f32.mxu1 %vm156_vm1, %v10222_v54  ;;  %9036 = vmatprep.mubr.msk.f32.mxu0 %vm156_vm1, %v10791_v53  ;;  %v11274_v54 = vld [vmem:[%s12672_s0 + $0x188] sm:$0xff]  ;;  %v12781_v53 = vld [vmem:[#allocation24_spill] sm:$0xff] }
 0x107   :  { %8708 = vmatpush3.msk.msra.mxu1 %vm349_vm0, %v10805_v28  ;;  %v7481_v28 = vld [vmem:[%s12672_s0 + $0x49] sm:$0xff] }
 0x108   :  { %9386 = vmatprep.subr.msk.mxu1 %vm349_vm0, %v9957_v1  ;;  %v11261_v1 = vld [vmem:[%s12672_s0 + $0x180] sm:$0xff]  ;;  %v12785_v30 = vld [vmem:[#allocation28_spill] sm:$0xff] }
 0x109   :  { %8615 = vmatmul.mubr.msk.f32.gmra.mrb[2].mxu1 %vm156_vm1, %v10232_v55  ;;  %9037 = vmatmul.mubr.msk.f32.gmra.mrb[22].mxu0 %vm156_vm1, %v10814_v16  ;;  %v7380_v55 = vld [vmem:[%s12672_s0 + $0x198] sm:$0xff]  ;;  %v12777_v16 = vld [vmem:[#allocation20_spill] sm:$0xff] }
 0x10a   :  { %8617 = vmatprep.mubr.msk.f32.mxu1 %vm156_vm1, %v10240_v57  ;;  %9039 = vmatprep.mubr.msk.f32.mxu0 %vm156_vm1, %v10824_v12  ;;  %v7381_v57 = vld [vmem:[%s12672_s0 + $0x1a0] sm:$0xff]  ;;  %v7479_v12 = vld [vmem:[%s12672_s0 + $0x31] sm:$0xff] }
 0x10d   :  { %8618 = vmatmul.mubr.msk.f32.gmra.mrb[4].mxu1 %vm156_vm1, %v10259_v60  ;;  %9040 = vmatmul.mubr.msk.f32.gmra.mrb[24].mxu0 %vm156_vm1, %v10844_v20  ;;  %v12759_v60 = vld [vmem:[#allocation2_spill] sm:$0xff]  ;;  %v12778_v20 = vld [vmem:[#allocation21_spill] sm:$0xff] }
 0x10e   :  { %8620 = vmatprep.mubr.msk.f32.mxu1 %vm156_vm1, %v10269_v62  ;;  %9042 = vmatprep.mubr.msk.f32.mxu0 %vm156_vm1, %v10854_v24  ;;  %v12760_v62 = vld [vmem:[#allocation3_spill] sm:$0xff]  ;;  %v7480_v24 = vld [vmem:[%s12672_s0 + $0x39] sm:$0xff] }
 0x111   :  { %8621 = vmatmul.mubr.msk.f32.gmra.mrb[6].mxu1 %vm156_vm1, %v10285_v0  ;;  %9043 = vmatmul.mubr.msk.f32.gmra.mrb[26].mxu0 %vm156_vm1, %v10872_v8  ;;  %v12761_v0 = vld [vmem:[#allocation4_spill] sm:$0xff] }
 0x112   :  { %8623 = vmatprep.mubr.msk.f32.mxu1 %vm156_vm1, %v10293_v3  ;;  %9045 = vmatprep.mubr.msk.f32.mxu0 %vm156_vm1, %v11261_v1  ;;  %v12762_v3 = vld [vmem:[#allocation5_spill] sm:$0xff]  ;;  %v7413_v8 = vld [vmem:[%s12672_s0 + $0x350] sm:$0xff] }
 0x115   :  { %8624 = vmatmul.mubr.msk.f32.gmra.mrb[8].mxu1 %vm156_vm1, %v10307_v5  ;;  %9046 = vmatmul.mubr.msk.f32.gmra.mrb[28].mxu0 %vm156_vm1, %v11274_v54  ;;  %v12763_v5 = vld [vmem:[#allocation6_spill] sm:$0xff] }
 0x116   :  { %8626 = vmatprep.mubr.msk.f32.mxu1 %vm156_vm1, %v10315_v7  ;;  %9048 = vmatprep.mubr.msk.f32.mxu0 %vm156_vm1, %v7380_v55  ;;  %v12764_v7 = vld [vmem:[#allocation7_spill] sm:$0xff]  ;;  %v12786_v55 = vld [vmem:[#allocation29_spill] sm:$0xff] }
 0x119   :  { %8627 = vmatmul.mubr.msk.f32.gmra.mrb[10].mxu1 %vm156_vm1, %v10329_v9  ;;  %9049 = vmatmul.mubr.msk.f32.gmra.mrb[30].mxu0 %vm156_vm1, %v7381_v57  ;;  %v12765_v9 = vld [vmem:[#allocation8_spill] sm:$0xff]  ;;  %v7488_v57 = vld [vmem:[%s12672_s0 + $0x99] sm:$0xff] }
 0x11a   :  { %8629 = vmatprep.mubr.msk.f32.mxu1 %vm156_vm1, %v10337_v11  ;;  %9051 = vmatprep.mubr.msk.f32.mxu0 %vm156_vm1, %v10927_v63  ;;  %v12766_v11 = vld [vmem:[#allocation9_spill] sm:$0xff]  ;;  %v7484_v63 = vld [vmem:[%s12672_s0 + $0x69] sm:$0xff] }
 0x11d   :  { %8630 = vmatmul.mubr.msk.f32.gmra.mrb[12].mxu1 %vm156_vm1, %v10351_v13  ;;  %9052 = vmatmul.mubr.msk.f32.gmra.mrb[32].mxu0 %vm156_vm1, %v10944_v4  ;;  %v1350_v13 = vld [vmem:[%s12672_s0 + $0x1b2] sm:$0xff] }
 0x11e   :  { %8632 = vmatprep.mubr.msk.f32.mxu1 %vm156_vm1, %v10359_v15  ;;  %9054 = vmatprep.mubr.msk.f32.mxu0 %vm156_vm1, %v10954_v49  ;;  %v12767_v15 = vld [vmem:[#allocation10_spill] sm:$0xff]  ;;  %v12782_v4 = vld [vmem:[#allocation25_spill] sm:$0xff] }
 0x11f   :  { %v12783_v49 = vld [vmem:[#allocation26_spill] sm:$0xff] }
 0x121   :  { %8633 = vmatmul.mubr.msk.f32.gmra.mrb[14].mxu1 %vm156_vm1, %v10373_v17  ;;  %9055 = vmatmul.mubr.msk.f32.gmra.mrb[34].mxu0 %vm156_vm1, %v10972_v45  ;;  %v1351_v17 = vld [vmem:[%s12672_s0 + $0x1ba] sm:$0xff] }
 0x122   :  { %8635 = vmatprep.mubr.msk.f32.mxu1 %vm156_vm1, %v10381_v19  ;;  %9057 = vmatprep.mubr.msk.f32.mxu0 %vm156_vm1, %v10982_v47  ;;  %v12768_v19 = vld [vmem:[#allocation11_spill] sm:$0xff]  ;;  %v12775_v47 = vld [vmem:[#allocation18_spill] sm:$0xff] }
 0x123   :  { %v7485_v45 = vld [vmem:[%s12672_s0 + $0x79] sm:$0xff] }
 0x125   :  { %8636 = vmatmul.mubr.msk.f32.gmra.mrb[16].mxu1 %vm156_vm1, %v10395_v21  ;;  %9058 = vmatmul.mubr.msk.f32.gmra.mrb[36].mxu0 %vm156_vm1, %v11000_v59  ;;  %v12769_v21 = vld [vmem:[#allocation12_spill] sm:$0xff]  ;;  %v12776_v59 = vld [vmem:[#allocation19_spill] sm:$0xff] }
 0x126   :  { %8638 = vmatprep.mubr.msk.f32.mxu1 %vm156_vm1, %v10403_v23  ;;  %9060 = vmatprep.mubr.msk.f32.mxu0 %vm156_vm1, %v11010_v43  ;;  %v12770_v23 = vld [vmem:[#allocation13_spill] sm:$0xff]  ;;  %v7412_v43 = vld [vmem:[%s12672_s0 + $0x348] sm:$0xff] }
 0x129   :  { %8639 = vmatmul.mubr.msk.f32.gmra.mrb[18].mxu1 %vm156_vm1, %v10417_v25  ;;  %9061 = vmatmul.mubr.msk.f32.gmra.mrb[38].mxu0 %vm156_vm1, %v11025_v34  ;;  %v12771_v25 = vld [vmem:[#allocation14_spill] sm:$0xff]  ;;  %v11420_v34 = vld [vmem:[%s12672_s0 + $0x338] sm:$0xff] }
 0x12a   :  { %8641 = vmatprep.mubr.msk.f32.mxu1 %vm156_vm1, %v10425_v27  ;;  %9063 = vmatprep.mubr.msk.f32.mxu0 %vm156_vm1, %v11033_v33  ;;  %v12772_v27 = vld [vmem:[#allocation15_spill] sm:$0xff]  ;;  %v12774_v33 = vld [vmem:[#allocation17_spill] sm:$0xff] }
 0x12d   :  { %8642 = vmatmul.mubr.msk.f32.gmra.mrb[20].mxu1 %vm156_vm1, %v10439_v29  ;;  %9064 = vmatmul.mubr.msk.f32.gmra.mrb[40].mxu0 %vm156_vm1, %v11045_v38  ;;  %v11407_v29 = vld [vmem:[%s12672_s0 + $0x330] sm:$0xff]  ;;  %v12784_v38 = vld [vmem:[#allocation27_spill] sm:$0xff] }
 0x12e   :  { %8644 = vmatprep.mubr.msk.f32.mxu1 %vm156_vm1, %v10447_v31  ;;  %9066 = vmatprep.mubr.msk.f32.mxu0 %vm156_vm1, %v11050_v40  ;;  %v12773_v31 = vld [vmem:[#allocation16_spill] sm:$0xff] }
 0x131   :  { %8645 = vmatmul.mubr.msk.f32.gmra.mrb[22].mxu1 %vm156_vm1, %v12759_v60  ;;  %9067 = vmatmul.mubr.msk.f32.gmra.mrb[42].mxu0 %vm156_vm1, %v11068_v39  ;;  %v7489_v60 = vld [vmem:[%s12672_s0 + $0xa9] sm:$0xff] }
 0x132   :  { %8647 = vmatprep.mubr.msk.f32.mxu1 %vm156_vm1, %v12760_v62  ;;  %9069 = vmatprep.mubr.msk.f32.mxu0 %vm156_vm1, %v11075_v41  ;;  %v12787_v62 = vld [vmem:[#allocation30_spill] sm:$0xff] }
 0x135   :  { %8648 = vmatmul.mubr.msk.f32.gmra.mrb[24].mxu1 %vm156_vm1, %v12761_v0  ;;  %9070 = vmatmul.mubr.msk.f32.gmra.mrb[44].mxu0 %vm156_vm1, %v11090_v58  ;;  %v12788_v0 = vld [vmem:[#allocation31_spill] sm:$0xff] }
 0x136   :  { %8650 = vmatprep.mubr.msk.f32.mxu1 %vm156_vm1, %v12762_v3  ;;  %9072 = vmatprep.mubr.msk.f32.mxu0 %vm156_vm1, %v11095_v42  ;;  %v7490_v3 = vld [vmem:[%s12672_s0 + $0xb1] sm:$0xff] }
 0x139   :  { %8651 = vmatmul.mubr.msk.f32.gmra.mrb[26].mxu1 %vm156_vm1, %v12763_v5  ;;  %9073 = vmatmul.mubr.msk.f32.gmra.mrb[46].mxu0 %vm156_vm1, %v11108_v44  ;;  %v7491_v5 = vld [vmem:[%s12672_s0 + $0xc1] sm:$0xff] }
 0x13a   :  { %8653 = vmatprep.mubr.msk.f32.mxu1 %vm156_vm1, %v12764_v7  ;;  %9075 = vmatprep.mubr.msk.f32.mxu0 %vm156_vm1, %v11113_v46  ;;  %v12789_v7 = vld [vmem:[#allocation32_spill] sm:$0xff] }
 0x13d   :  { %8654 = vmatmul.mubr.msk.f32.gmra.mrb[28].mxu1 %vm156_vm1, %v12765_v9  ;;  %9076 = vmatmul.mubr.msk.f32.gmra.mrb[48].mxu0 %vm156_vm1, %v11126_v48  ;;  %v12790_v9 = vld [vmem:[#allocation33_spill] sm:$0xff] }
 0x13e   :  { %8656 = vmatprep.mubr.msk.f32.mxu1 %vm156_vm1, %v12766_v11  ;;  %9078 = vmatprep.mubr.msk.f32.mxu0 %vm156_vm1, %v11131_v50  ;;  %v7492_v11 = vld [vmem:[%s12672_s0 + $0xc9] sm:$0xff] }
 0x141   :  { %8657 = vmatmul.mubr.msk.f32.gmra.mrb[30].mxu1 %vm156_vm1, %v12767_v15  ;;  %9079 = vmatmul.mubr.msk.f32.gmra.mrb[50].mxu0 %vm156_vm1, %v11144_v52  ;;  %v12791_v15 = vld [vmem:[#allocation34_spill] sm:$0xff] }
 0x142   :  { %8659 = vmatprep.mubr.msk.f32.mxu1 %vm156_vm1, %v1350_v13  ;;  %9081 = vmatprep.mubr.msk.f32.mxu0 %vm156_vm1, %v11149_v56  ;;  %v7493_v13 = vld [vmem:[%s12672_s0 + $0xd9] sm:$0xff] }
 0x145   :  { %8660 = vmatmul.mubr.msk.f32.gmra.mrb[32].mxu1 %vm156_vm1, %v1351_v17  ;;  %9082 = vmatmul.mubr.msk.f32.gmra.mrb[52].mxu0 %vm156_vm1, %v11162_v61  ;;  %v12792_v17 = vld [vmem:[#allocation35_spill] sm:$0xff] }
 0x146   :  { %8662 = vmatprep.mubr.msk.f32.mxu1 %vm156_vm1, %v12768_v19  ;;  %9084 = vmatprep.mubr.msk.f32.mxu0 %vm156_vm1, %v11167_v2  ;;  %v7494_v19 = vld [vmem:[%s12672_s0 + $0xe1] sm:$0xff] }
 0x149   :  { %8663 = vmatmul.mubr.msk.f32.gmra.mrb[34].mxu1 %vm156_vm1, %v12769_v21  ;;  %9085 = vmatmul.mubr.msk.f32.gmra.mrb[54].mxu0 %vm156_vm1, %v11180_v6  ;;  %v7495_v21 = vld [vmem:[%s12672_s0 + $0xf1] sm:$0xff] }
 0x14a   :  { %8665 = vmatprep.mubr.msk.f32.mxu1 %vm156_vm1, %v12770_v23  ;;  %9087 = vmatprep.mubr.msk.f32.mxu0 %vm156_vm1, %v11185_v10  ;;  %v12793_v23 = vld [vmem:[#allocation36_spill] sm:$0xff] }
 0x14d   :  { %8666 = vmatmul.mubr.msk.f32.gmra.mrb[36].mxu1 %vm156_vm1, %v12771_v25  ;;  %9088 = vmatmul.mubr.msk.f32.gmra.mrb[56].mxu0 %vm156_vm1, %v11198_v14  ;;  %v12794_v25 = vld [vmem:[#allocation37_spill] sm:$0xff] }
 0x14e   :  { %8668 = vmatprep.mubr.msk.f32.mxu1 %vm156_vm1, %v12772_v27  ;;  %9090 = vmatprep.mubr.msk.f32.mxu0 %vm156_vm1, %v11203_v18  ;;  %v7496_v27 = vld [vmem:[%s12672_s0 + $0xf9] sm:$0xff] }
 0x151   :  { %8669 = vmatmul.mubr.msk.f32.gmra.mrb[38].mxu1 %vm156_vm1, %v12773_v31  ;;  %9091 = vmatmul.mubr.msk.f32.gmra.mrb[58].mxu0 %vm156_vm1, %v11216_v22  ;;  %v7497_v31 = vld [vmem:[%s12672_s0 + $0x109] sm:$0xff] }
 0x152   :  { %8671 = vmatprep.mubr.msk.f32.mxu1 %vm156_vm1, %v12774_v33  ;;  %9093 = vmatprep.mubr.msk.f32.mxu0 %vm156_vm1, %v11407_v29  ;;  %v12795_v33 = vld [vmem:[#allocation38_spill] sm:$0xff] }
 0x155   :  { %8672 = vmatmul.mubr.msk.f32.gmra.mrb[40].mxu1 %vm156_vm1, %v12775_v47  ;;  %9094 = vmatmul.mubr.msk.f32.gmra.mrb[60].mxu0 %vm156_vm1, %v11420_v34  ;;  %v7498_v47 = vld [vmem:[%s12672_s0 + $0x111] sm:$0xff] }
 0x156   :  { %8674 = vmatprep.mubr.msk.f32.mxu1 %vm156_vm1, %v12776_v59  ;;  %9096 = vmatprep.mubr.msk.f32.mxu0 %vm156_vm1, %v7412_v43  ;;  %v12796_v43 = vld [vmem:[#allocation39_spill] sm:$0xff]  ;;  %v6963_v59 = vld [vmem:[%s12672_s0 + $0x18] sm:$0xff] }
 0x159   :  { %8675 = vmatmul.mubr.msk.f32.gmra.mrb[42].mxu1 %vm156_vm1, %v12777_v16  ;;  %9097 = vmatmul.mubr.msk.f32.gmra.mrb[62].mxu0 %vm156_vm1, %v7413_v8  ;;  %v7499_v8 = vld [vmem:[%s12672_s0 + $0x121] sm:$0xff] }
 0x15a   :  { %8677 = vmatprep.mubr.msk.f32.mxu1 %vm156_vm1, %v12778_v20  ;;  %9101 = vmatprep.mubr.msk.f32.mxu0 %vm156_vm1, %v7479_v12  ;;  %v12797_v12 = vld [vmem:[#allocation40_spill] sm:$0xff]  ;;  %v6964_v16 = vld [vmem:[%s12672_s0 + $0x20] sm:$0xff] }
 0x15b   :  { %v7500_v20 = vld [vmem:[%s12672_s0 + $0x129] sm:$0xff] }
 0x15d   :  { %8678 = vmatmul.mubr.msk.f32.gmra.mrb[44].mxu1 %vm156_vm1, %v12779_v32  ;;  %9102 = vmatmul.mubr.msk.f32.vlgmr.msra.gmra.mrb[0].mxu0 %vm156_vm1, %v7480_v24  ;;  %v6965_v24 = vld [vmem:[%s12672_s0 + $0x30] sm:$0xff]  ;;  %v6966_v32 = vld [vmem:[%s12672_s0 + $0x38] sm:$0xff] }
 0x15e   :  { %9198 = vmatpush3.msk.msra.mxu0 %vm349_vm0, %v11059_v36  ;;  %8680 = vmatprep.mubr.msk.f32.mxu1 %vm156_vm1, %v12780_v35  ;;  %v7486_v36 = vld [vmem:[%s12672_s0 + $0x81] sm:$0xff] }
 0x15f   :  { %9104 = vmatprep.mubr.msk.f32.mxu0 %vm156_vm1, %v7481_v28  ;;  %v7501_v28 = vld [vmem:[%s12672_s0 + $0x139] sm:$0xff]  ;;  %v7502_v35 = vld [vmem:[%s12672_s0 + $0x141] sm:$0xff] }
 0x161   :  { %8681 = vmatmul.mubr.msk.f32.gmra.mrb[46].mxu1 %vm156_vm1, %v12781_v53  ;;  %9105 = vmatmul.mubr.msk.f32.gmra.mrb[2].mxu0 %vm156_vm1, %v7482_v37  ;;  %v6967_v37 = vld [vmem:[%s12672_s0 + $0x48] sm:$0xff] }
 0x162   :  { %8683 = vmatprep.mubr.msk.f32.mxu1 %vm156_vm1, %v12782_v4  ;;  %9107 = vmatprep.mubr.msk.f32.mxu0 %vm156_vm1, %v7483_v51  ;;  %v7503_v51 = vld [vmem:[%s12672_s0 + $0x151] sm:$0xff]  ;;  %v9905_v53 = vld [vmem:[%s12671_s1 + $0xc] sm:$0x7] }
 0x163   :  { %v6968_v4 = vld [vmem:[%s12672_s0 + $0x50] sm:$0xff] }
 0x165   :  { %8684 = vmatmul.mubr.msk.f32.gmra.mrb[48].mxu1 %vm156_vm1, %v12783_v49  ;;  %9108 = vmatmul.mubr.msk.f32.gmra.mrb[4].mxu0 %vm156_vm1, %v7484_v63  ;;  %v7504_v63 = vld [vmem:[%s12672_s0 + $0x159] sm:$0xff]  ;;  %v7505_v49 = vld [vmem:[%s12672_s0 + $0x169] sm:$0xff] }
 0x166   :  { %8686 = vmatprep.mubr.msk.f32.mxu1 %vm156_vm1, %v12784_v38  ;;  %9110 = vmatprep.mubr.msk.f32.mxu0 %vm156_vm1, %v7485_v45  ;;  %v6969_v45 = vld [vmem:[%s12672_s0 + $0x60] sm:$0xff]  ;;  %v6970_v38 = vld [vmem:[%s12672_s0 + $0x68] sm:$0xff] }
 0x169   :  { %8687 = vmatmul.mubr.msk.f32.gmra.mrb[50].mxu1 %vm156_vm1, %v12785_v30  ;;  %9111 = vmatmul.mubr.msk.f32.gmra.mrb[6].mxu0 %vm156_vm1, %v7486_v36  ;;  %v7506_v36 = vld [vmem:[%s12672_s0 + $0x171] sm:$0xff]  ;;  %v7507_v30 = vld [vmem:[%s12672_s0 + $0x181] sm:$0xff] }
 0x16a   :  { %8689 = vmatprep.mubr.msk.f32.mxu1 %vm156_vm1, %v12786_v55  ;;  %9113 = vmatprep.mubr.msk.f32.mxu0 %vm156_vm1, %v7487_v26  ;;  %v6971_v26 = vld [vmem:[%s12672_s0 + $0x78] sm:$0xff]  ;;  %v6972_v55 = vld [vmem:[%s12672_s0 + $0x80] sm:$0xff] }
 0x16d   :  { %8690 = vmatmul.mubr.msk.f32.gmra.mrb[52].mxu1 %vm156_vm1, %v12787_v62  ;;  %9114 = vmatmul.mubr.msk.f32.gmra.mrb[8].mxu0 %vm156_vm1, %v7488_v57  ;;  %v7508_v57 = vld [vmem:[%s12672_s0 + $0x189] sm:$0xff]  ;;  %v7509_v62 = vld [vmem:[%s12672_s0 + $0x199] sm:$0xff] }
 0x16e   :  { %8692 = vmatprep.mubr.msk.f32.mxu1 %vm156_vm1, %v12788_v0  ;;  %9116 = vmatprep.mubr.msk.f32.mxu0 %vm156_vm1, %v7489_v60  ;;  %v6973_v60 = vld [vmem:[%s12672_s0 + $0x90] sm:$0xff]  ;;  %v6974_v0 = vld [vmem:[%s12672_s0 + $0x98] sm:$0xff] }
 0x171   :  { %8693 = vmatmul.mubr.msk.f32.gmra.mrb[54].mxu1 %vm156_vm1, %v12789_v7  ;;  %9117 = vmatmul.mubr.msk.f32.gmra.mrb[10].mxu0 %vm156_vm1, %v7490_v3  ;;  %v7510_v3 = vld [vmem:[%s12672_s0 + $0x1a1] sm:$0xff] }
 0x172   :  { %8695 = vmatprep.mubr.msk.f32.mxu1 %vm156_vm1, %v12790_v9  ;;  %9119 = vmatprep.mubr.msk.f32.mxu0 %vm156_vm1, %v7491_v5  ;;  %v6975_v5 = vld [vmem:[%s12672_s0 + $0xa8] sm:$0xff]  ;;  %v6976_v9 = vld [vmem:[%s12672_s0 + $0xb0] sm:$0xff] }
 0x173   :  { %v7511_v7 = vld [vmem:[%s12672_s0 + $0x1e1] sm:$0xff] }
 0x175   :  { %8696 = vmatmul.mubr.msk.f32.gmra.mrb[56].mxu1 %vm156_vm1, %v12791_v15  ;;  %9120 = vmatmul.mubr.msk.f32.gmra.mrb[12].mxu0 %vm156_vm1, %v7492_v11  ;;  %v7512_v11 = vld [vmem:[%s12672_s0 + $0x1e9] sm:$0xff]  ;;  %v7513_v15 = vld [vmem:[%s12672_s0 + $0x1f9] sm:$0xff] }
 0x176   :  { %8698 = vmatprep.mubr.msk.f32.mxu1 %vm156_vm1, %v12792_v17  ;;  %9122 = vmatprep.mubr.msk.f32.mxu0 %vm156_vm1, %v7493_v13  ;;  %v6977_v13 = vld [vmem:[%s12672_s0 + $0xc0] sm:$0xff]  ;;  %v6978_v17 = vld [vmem:[%s12672_s0 + $0xc8] sm:$0xff] }
 0x179   :  { %8699 = vmatmul.mubr.msk.f32.gmra.mrb[58].mxu1 %vm156_vm1, %v12793_v23  ;;  %9123 = vmatmul.mubr.msk.f32.gmra.mrb[14].mxu0 %vm156_vm1, %v7494_v19  ;;  %v7514_v19 = vld [vmem:[%s12672_s0 + $0x201] sm:$0xff]  ;;  %v7515_v23 = vld [vmem:[%s12672_s0 + $0x211] sm:$0xff] }
 0x17a   :  { %8701 = vmatprep.mubr.msk.f32.mxu1 %vm156_vm1, %v12794_v25  ;;  %9125 = vmatprep.mubr.msk.f32.mxu0 %vm156_vm1, %v7495_v21  ;;  %v6979_v21 = vld [vmem:[%s12672_s0 + $0xd8] sm:$0xff]  ;;  %v6980_v25 = vld [vmem:[%s12672_s0 + $0xe0] sm:$0xff] }
 0x17d   :  { %8702 = vmatmul.mubr.msk.f32.gmra.mrb[60].mxu1 %vm156_vm1, %v12795_v33  ;;  %9126 = vmatmul.mubr.msk.f32.gmra.mrb[16].mxu0 %vm156_vm1, %v7496_v27  ;;  %v7516_v27 = vld [vmem:[%s12672_s0 + $0x219] sm:$0xff]  ;;  %v7517_v33 = vld [vmem:[%s12672_s0 + $0x229] sm:$0xff] }
 0x17e   :  { %8704 = vmatprep.mubr.msk.f32.mxu1 %vm156_vm1, %v12796_v43  ;;  %9128 = vmatprep.mubr.msk.f32.mxu0 %vm156_vm1, %v7497_v31  ;;  %v6981_v31 = vld [vmem:[%s12672_s0 + $0xf0] sm:$0xff]  ;;  %v6982_v43 = vld [vmem:[%s12672_s0 + $0xf8] sm:$0xff] }
 0x181   :  { %8705 = vmatmul.mubr.msk.f32.gmra.mrb[62].mxu1 %vm156_vm1, %v12797_v12  ;;  %9129 = vmatmul.mubr.msk.f32.gmra.mrb[18].mxu0 %vm156_vm1, %v7498_v47  ;;  %v7518_v47 = vld [vmem:[%s12672_s0 + $0x231] sm:$0xff] }
 0x182   :  { %8709 = vmatprep.mubr.msk.f32.mxu1 %vm156_vm1, %v6963_v59  ;;  %9131 = vmatprep.mubr.msk.f32.mxu0 %vm156_vm1, %v7499_v8  ;;  %v6983_v59 = vld [vmem:[%s12672_s0 + $0x108] sm:$0xff]  ;;  %v6984_v12 = vld [vmem:[%s12672_s0 + $0x110] sm:$0xff] }
 0x183   :  { %v7519_v8 = vld [vmem:[%s12672_s0 + $0x241] sm:$0xff] }
 0x185   :  { %8710 = vmatmul.mubr.msk.f32.vlgmr.msra.gmra.mrb[0].mxu1 %vm156_vm1, %v6964_v16  ;;  %9132 = vmatmul.mubr.msk.f32.gmra.mrb[20].mxu0 %vm156_vm1, %v7500_v20  ;;  %v7520_v16 = vld [vmem:[%s12672_s0 + $0x249] sm:$0xff]  ;;  %v6985_v20 = vld [vmem:[%s12672_s0 + $0x120] sm:$0xff] }
 0x186   :  { %8712 = vmatprep.mubr.msk.f32.mxu1 %vm156_vm1, %v6965_v24  ;;  %9134 = vmatprep.mubr.msk.f32.mxu0 %vm156_vm1, %v7501_v28  ;;  %v11744_v24 = vld [vmem:[%s12672_s0 + $0x259] sm:$0xff]  ;;  %v6986_v28 = vld [vmem:[%s12672_s0 + $0x128] sm:$0xff] }
 0x187   :  { %9387 = vmatpush3.msk.msra.mxu1 %vm349_vm0, %v9905_v53  ;;  %v11779_v53 = vld [vmem:[%s12672_s0 + $0x279] sm:$0xff]  ;;  %vm6681_vm0 = vcmask 261120  }
 0x189   :  { %8713 = vmatmul.mubr.msk.f32.gmra.mrb[2].mxu1 %vm156_vm1, %v6966_v32  ;;  %9135 = vmatmul.mubr.msk.f32.gmra.mrb[22].mxu0 %vm156_vm1, %v7502_v35  ;;  %v11757_v32 = vld [vmem:[%s12672_s0 + $0x261] sm:$0xff]  ;;  %v6987_v35 = vld [vmem:[%s12672_s0 + $0x138] sm:$0xff] }
 0x18a   :  { %8715 = vmatprep.mubr.msk.f32.mxu1 %vm156_vm1, %v6967_v37  ;;  %9137 = vmatprep.mubr.msk.f32.mxu0 %vm156_vm1, %v7503_v51  ;;  %v11765_v37 = vld [vmem:[%s12672_s0 + $0x271] sm:$0xff]  ;;  %v6988_v51 = vld [vmem:[%s12672_s0 + $0x140] sm:$0xff] }
 0x18d   :  { %8716 = vmatmul.mubr.msk.f32.gmra.mrb[4].mxu1 %vm156_vm1, %v6968_v4  ;;  %9138 = vmatmul.mubr.msk.f32.gmra.mrb[24].mxu0 %vm156_vm1, %v7504_v63  ;;  %v6989_v4 = vld [vmem:[%s12672_s0 + $0x150] sm:$0xff] }
 0x18e   :  { %8718 = vmatprep.mubr.msk.f32.mxu1 %vm156_vm1, %v6969_v45  ;;  %9140 = vmatprep.mubr.msk.f32.mxu0 %vm156_vm1, %v7505_v49  ;;  %v11787_v63 = vld [vmem:[%s12672_s0 + $0x289] sm:$0xff]  ;;  %v6990_v45 = vld [vmem:[%s12672_s0 + $0x158] sm:$0xff] }
 0x18f   :  { %v11801_v49 = vld [vmem:[%s12672_s0 + $0x291] sm:$0xff] }
 0x191   :  { %8719 = vmatmul.mubr.msk.f32.gmra.mrb[6].mxu1 %vm156_vm1, %v6970_v38  ;;  %9141 = vmatmul.mubr.msk.f32.gmra.mrb[26].mxu0 %vm156_vm1, %v7506_v36  ;;  %v6991_v38 = vld [vmem:[%s12672_s0 + $0x168] sm:$0xff] }
 0x192   :  { %8721 = vmatprep.mubr.msk.f32.mxu1 %vm156_vm1, %v6971_v26  ;;  %9143 = vmatprep.mubr.msk.f32.mxu0 %vm156_vm1, %v7507_v30  ;;  %v11809_v36 = vld [vmem:[%s12672_s0 + $0x2a1] sm:$0xff]  ;;  %v6992_v26 = vld [vmem:[%s12672_s0 + $0x170] sm:$0xff] }
 0x193   :  { %v11823_v30 = vld [vmem:[%s12672_s0 + $0x2a9] sm:$0xff] }
 0x195   :  { %8722 = vmatmul.mubr.msk.f32.gmra.mrb[8].mxu1 %vm156_vm1, %v6972_v55  ;;  %9144 = vmatmul.mubr.msk.f32.gmra.mrb[28].mxu0 %vm156_vm1, %v7508_v57  ;;  %v11828_v55 = vld [vmem:[%s12672_s0 + $0x2b9] sm:$0xff]  ;;  %v11840_v57 = vld [vmem:[%s12672_s0 + $0x2c1] sm:$0xff] }
 0x196   :  { %8724 = vmatprep.mubr.msk.f32.mxu1 %vm156_vm1, %v6973_v60  ;;  %9146 = vmatprep.mubr.msk.f32.mxu0 %vm156_vm1, %v7509_v62  ;;  %v6995_v60 = vld [vmem:[%s12672_s0 + $0x1c8] sm:$0xff]  ;;  %v11848_v62 = vld [vmem:[%s12672_s0 + $0x2d1] sm:$0xff] }
 0x199   :  { %8725 = vmatmul.mubr.msk.f32.gmra.mrb[10].mxu1 %vm156_vm1, %v6974_v0  ;;  %9147 = vmatmul.mubr.msk.f32.gmra.mrb[30].mxu0 %vm156_vm1, %v7510_v3  ;;  %v11863_v0 = vld [vmem:[%s12672_s0 + $0x2d9] sm:$0xff]  ;;  %v11871_v3 = vld [vmem:[%s12672_s0 + $0x2e9] sm:$0xff] }
 0x19a   :  { %8727 = vmatprep.mubr.msk.f32.mxu1 %vm156_vm1, %v6975_v5  ;;  %9149 = vmatprep.mubr.msk.f32.mxu0 %vm156_vm1, %v7511_v7  ;;  %v6998_v5 = vld [vmem:[%s12672_s0 + $0x1e8] sm:$0xff]  ;;  %v11885_v7 = vld [vmem:[%s12672_s0 + $0x2f1] sm:$0xff] }
 0x19d   :  { %8728 = vmatmul.mubr.msk.f32.gmra.mrb[12].mxu1 %vm156_vm1, %v6976_v9  ;;  %9150 = vmatmul.mubr.msk.f32.gmra.mrb[32].mxu0 %vm156_vm1, %v7512_v11  ;;  %v6999_v9 = vld [vmem:[%s12672_s0 + $0x1f8] sm:$0xff]  ;;  %v11893_v11 = vld [vmem:[%s12672_s0 + $0x301] sm:$0xff] }
 0x19e   :  { %8730 = vmatprep.mubr.msk.f32.mxu1 %vm156_vm1, %v6977_v13  ;;  %9152 = vmatprep.mubr.msk.f32.mxu0 %vm156_vm1, %v7513_v15  ;;  %v7000_v13 = vld [vmem:[%s12672_s0 + $0x200] sm:$0xff]  ;;  %v11907_v15 = vld [vmem:[%s12672_s0 + $0x309] sm:$0xff] }
 0x1a1   :  { %8731 = vmatmul.mubr.msk.f32.gmra.mrb[14].mxu1 %vm156_vm1, %v6978_v17  ;;  %9153 = vmatmul.mubr.msk.f32.gmra.mrb[34].mxu0 %vm156_vm1, %v7514_v19  ;;  %v7001_v17 = vld [vmem:[%s12672_s0 + $0x210] sm:$0xff]  ;;  %v11915_v19 = vld [vmem:[%s12672_s0 + $0x319] sm:$0xff] }
 0x1a2   :  { %8733 = vmatprep.mubr.msk.f32.mxu1 %vm156_vm1, %v6979_v21  ;;  %9155 = vmatprep.mubr.msk.f32.mxu0 %vm156_vm1, %v7515_v23  ;;  %v7002_v21 = vld [vmem:[%s12672_s0 + $0x218] sm:$0xff]  ;;  %v11929_v23 = vld [vmem:[%s12672_s0 + $0x321] sm:$0xff] }
 0x1a5   :  { %8734 = vmatmul.mubr.msk.f32.gmra.mrb[16].mxu1 %vm156_vm1, %v6980_v25  ;;  %9156 = vmatmul.mubr.msk.f32.gmra.mrb[36].mxu0 %vm156_vm1, %v7516_v27  ;;  %v7003_v25 = vld [vmem:[%s12672_s0 + $0x228] sm:$0xff]  ;;  %v11937_v27 = vld [vmem:[%s12672_s0 + $0x331] sm:$0xff] }
 0x1a6   :  { %8736 = vmatprep.mubr.msk.f32.mxu1 %vm156_vm1, %v6981_v31  ;;  %9158 = vmatprep.mubr.msk.f32.mxu0 %vm156_vm1, %v7517_v33  ;;  %v7004_v31 = vld [vmem:[%s12672_s0 + $0x230] sm:$0xff]  ;;  %v11951_v33 = vld [vmem:[%s12672_s0 + $0x339] sm:$0xff] }
 0x1a9   :  { %8737 = vmatmul.mubr.msk.f32.gmra.mrb[18].mxu1 %vm156_vm1, %v6982_v43  ;;  %9159 = vmatmul.mubr.msk.f32.gmra.mrb[38].mxu0 %vm156_vm1, %v7518_v47  ;;  %v7005_v43 = vld [vmem:[%s12672_s0 + $0x240] sm:$0xff]  ;;  %v7541_v47 = vld [vmem:[%s12672_s0 + $0x349] sm:$0xff] }
 0x1aa   :  { %8739 = vmatprep.mubr.msk.f32.mxu1 %vm156_vm1, %v6983_v59  ;;  %9161 = vmatprep.mubr.msk.f32.mxu0 %vm156_vm1, %v7519_v8  ;;  %v7006_v59 = vld [vmem:[%s12672_s0 + $0x248] sm:$0xff]  ;;  %v7542_v8 = vld [vmem:[%s12672_s0 + $0x351] sm:$0xff] }
 0x1ad   :  { %8740 = vmatmul.mubr.msk.f32.gmra.mrb[20].mxu1 %vm156_vm1, %v6984_v12  ;;  %9162 = vmatmul.mubr.msk.f32.gmra.mrb[40].mxu0 %vm156_vm1, %v7520_v16  ;;  %v7608_v12 = vld [vmem:[%s12672_s0 + $0x32] sm:$0xff]  ;;  %v7609_v16 = vld [vmem:[%s12672_s0 + $0x3a] sm:$0xff] }
 0x1ae   :  { %8742 = vmatprep.mubr.msk.f32.mxu1 %vm156_vm1, %v6985_v20  ;;  %9164 = vmatprep.mubr.msk.f32.mxu0 %vm156_vm1, %v11744_v24  ;;  %v7610_v20 = vld [vmem:[%s12672_s0 + $0x4a] sm:$0xff] }
 0x1b1   :  { %8743 = vmatmul.mubr.msk.f32.gmra.mrb[22].mxu1 %vm156_vm1, %v6986_v28  ;;  %9165 = vmatmul.mubr.msk.f32.gmra.mrb[42].mxu0 %vm156_vm1, %v11757_v32  ;;  %v7612_v28 = vld [vmem:[%s12672_s0 + $0x62] sm:$0xff] }
 0x1b2   :  { %8745 = vmatprep.mubr.msk.f32.mxu1 %vm156_vm1, %v6987_v35  ;;  %9167 = vmatprep.mubr.msk.f32.mxu0 %vm156_vm1, %v11765_v37  ;;  %v7634_v35 = vld [vmem:[%s12672_s0 + $0x16a] sm:$0xff] }
 0x1b5   :  { %8746 = vmatmul.mubr.msk.f32.gmra.mrb[24].mxu1 %vm156_vm1, %v6988_v51  ;;  %9168 = vmatmul.mubr.msk.f32.gmra.mrb[44].mxu0 %vm156_vm1, %v11779_v53  ;;  %v7636_v51 = vld [vmem:[%s12672_s0 + $0x182] sm:$0xff] }
 0x1b6   :  { %8748 = vmatprep.mubr.msk.f32.mxu1 %vm156_vm1, %v6989_v4  ;;  %9170 = vmatprep.mubr.msk.f32.mxu0 %vm156_vm1, %v11787_v63  ;;  %v7638_v4 = vld [vmem:[%s12672_s0 + $0x19a] sm:$0xff] }
 0x1b9   :  { %8749 = vmatmul.mubr.msk.f32.gmra.mrb[26].mxu1 %vm156_vm1, %v6990_v45  ;;  %9171 = vmatmul.mubr.msk.f32.gmra.mrb[46].mxu0 %vm156_vm1, %v11801_v49  ;;  %v7640_v45 = vld [vmem:[%s12672_s0 + $0x1e2] sm:$0xff] }
 0x1ba   :  { %8751 = vmatprep.mubr.msk.f32.mxu1 %vm156_vm1, %v6991_v38  ;;  %9173 = vmatprep.mubr.msk.f32.mxu0 %vm156_vm1, %v11809_v36  ;;  %v7642_v38 = vld [vmem:[%s12672_s0 + $0x1fa] sm:$0xff] }
 0x1bd   :  { %8752 = vmatmul.mubr.msk.f32.gmra.mrb[28].mxu1 %vm156_vm1, %v6992_v26  ;;  %9174 = vmatmul.mubr.msk.f32.gmra.mrb[48].mxu0 %vm156_vm1, %v11823_v30  ;;  %v7644_v26 = vld [vmem:[%s12672_s0 + $0x212] sm:$0xff] }
 0x1be   :  { %8754 = vmatprep.mubr.msk.f32.mxu1 %vm156_vm1, %v11261_v1  ;;  %9176 = vmatprep.mubr.msk.f32.mxu0 %vm156_vm1, %v11828_v55  ;;  %v6996_v1 = vld [vmem:[%s12672_s0 + $0x1d0] sm:$0xff] }
 0x1c1   :  { %8755 = vmatmul.mubr.msk.f32.gmra.mrb[30].mxu1 %vm156_vm1, %v11274_v54  ;;  %9177 = vmatmul.mubr.msk.f32.gmra.mrb[50].mxu0 %vm156_vm1, %v11840_v57  ;;  %v6997_v54 = vld [vmem:[%s12672_s0 + $0x1e0] sm:$0xff] }
 0x1c2   :  { %8757 = vmatprep.mubr.msk.f32.mxu1 %vm156_vm1, %v6995_v60  ;;  %9179 = vmatprep.mubr.msk.f32.mxu0 %vm156_vm1, %v11848_v62  ;;  %v7648_v60 = vld [vmem:[%s12672_s0 + $0x242] sm:$0xff] }
 0x1c5   :  { %8758 = vmatmul.mubr.msk.f32.gmra.mrb[32].mxu1 %vm156_vm1, %v6996_v1  ;;  %9180 = vmatmul.mubr.msk.f32.gmra.mrb[52].mxu0 %vm156_vm1, %v11863_v0  ;;  %v7650_v1 = vld [vmem:[%s12672_s0 + $0x25a] sm:$0xff] }
 0x1c6   :  { %8760 = vmatprep.mubr.msk.f32.mxu1 %vm156_vm1, %v6997_v54  ;;  %9182 = vmatprep.mubr.msk.f32.mxu0 %vm156_vm1, %v11871_v3  ;;  %v7652_v54 = vld [vmem:[%s12672_s0 + $0x272] sm:$0xff] }
 0x1c9   :  { %8761 = vmatmul.mubr.msk.f32.gmra.mrb[34].mxu1 %vm156_vm1, %v6998_v5  ;;  %9183 = vmatmul.mubr.msk.f32.gmra.mrb[54].mxu0 %vm156_vm1, %v11885_v7  ;;  %v7654_v5 = vld [vmem:[%s12672_s0 + $0x28a] sm:$0xff] }
 0x1ca   :  { %8763 = vmatprep.mubr.msk.f32.mxu1 %vm156_vm1, %v6999_v9  ;;  %9185 = vmatprep.mubr.msk.f32.mxu0 %vm156_vm1, %v11893_v11  ;;  %v7656_v9 = vld [vmem:[%s12672_s0 + $0x2a2] sm:$0xff] }
 0x1cd   :  { %8764 = vmatmul.mubr.msk.f32.gmra.mrb[36].mxu1 %vm156_vm1, %v7000_v13  ;;  %9186 = vmatmul.mubr.msk.f32.gmra.mrb[56].mxu0 %vm156_vm1, %v11907_v15  ;;  %v7658_v13 = vld [vmem:[%s12672_s0 + $0x2ba] sm:$0xff] }
 0x1ce   :  { %8766 = vmatprep.mubr.msk.f32.mxu1 %vm156_vm1, %v7001_v17  ;;  %9188 = vmatprep.mubr.msk.f32.mxu0 %vm156_vm1, %v11915_v19  ;;  %v7660_v17 = vld [vmem:[%s12672_s0 + $0x2d2] sm:$0xff] }
 0x1d1   :  { %8767 = vmatmul.mubr.msk.f32.gmra.mrb[38].mxu1 %vm156_vm1, %v7002_v21  ;;  %9189 = vmatmul.mubr.msk.f32.gmra.mrb[58].mxu0 %vm156_vm1, %v11929_v23  ;;  %v7662_v21 = vld [vmem:[%s12672_s0 + $0x2ea] sm:$0xff] }
 0x1d2   :  { %8769 = vmatprep.mubr.msk.f32.mxu1 %vm156_vm1, %v7003_v25  ;;  %9191 = vmatprep.mubr.msk.f32.mxu0 %vm156_vm1, %v11937_v27  ;;  %v7664_v25 = vld [vmem:[%s12672_s0 + $0x302] sm:$0xff] }
 0x1d5   :  { %8770 = vmatmul.mubr.msk.f32.gmra.mrb[40].mxu1 %vm156_vm1, %v7004_v31  ;;  %9192 = vmatmul.mubr.msk.f32.gmra.mrb[60].mxu0 %vm156_vm1, %v11951_v33  ;;  %v7666_v31 = vld [vmem:[%s12672_s0 + $0x31a] sm:$0xff] }
 0x1d6   :  { %8772 = vmatprep.mubr.msk.f32.mxu1 %vm156_vm1, %v7005_v43  ;;  %9194 = vmatprep.mubr.msk.f32.mxu0 %vm156_vm1, %v7541_v47  ;;  %v7668_v43 = vld [vmem:[%s12672_s0 + $0x332] sm:$0xff]  ;;  %v7669_v47 = vld [vmem:[%s12672_s0 + $0x33a] sm:$0xff] }
 0x1d9   :  { %8773 = vmatmul.mubr.msk.f32.gmra.mrb[42].mxu1 %vm156_vm1, %v7006_v59  ;;  %9195 = vmatmul.mubr.msk.f32.gmra.mrb[62].mxu0 %vm156_vm1, %v7542_v8  ;;  %v7670_v59 = vld [vmem:[%s12672_s0 + $0x34a] sm:$0xff]  ;;  %v7671_v8 = vld [vmem:[%s12672_s0 + $0x352] sm:$0xff] }
 0x1da   :  { %8775 = vmatprep.mubr.msk.f32.mxu1 %vm156_vm1, %v11050_v40  ;;  %9199 = vmatprep.mubr.msk.f32.mxu0 %vm156_vm1, %v7608_v12  ;;  %v7611_v40 = vld [vmem:[%s12672_s0 + $0x52] sm:$0xff] }
 0x1dd   :  { %8776 = vmatmul.mubr.msk.f32.gmra.mrb[44].mxu1 %vm156_vm1, %v11068_v39  ;;  %9200 = vmatmul.mubr.msk.f32.vlgmr.msra.gmra.mrb[0].mxu0 %vm156_vm1, %v7609_v16  ;;  %v7613_v39 = vld [vmem:[%s12672_s0 + $0x6a] sm:$0xff] }
 0x1de   :  { %8778 = vmatprep.mubr.msk.f32.mxu1 %vm156_vm1, %v11075_v41  ;;  %9202 = vmatprep.mubr.msk.f32.mxu0 %vm156_vm1, %v7610_v20  ;;  %v7614_v41 = vld [vmem:[%s12672_s0 + $0x7a] sm:$0xff] }
 0x1e1   :  { %8779 = vmatmul.mubr.msk.f32.gmra.mrb[46].mxu1 %vm156_vm1, %v11090_v58  ;;  %9203 = vmatmul.mubr.msk.f32.gmra.mrb[2].mxu0 %vm156_vm1, %v7611_v40  ;;  %v7615_v58 = vld [vmem:[%s12672_s0 + $0x82] sm:$0xff] }
 0x1e2   :  { %8781 = vmatprep.mubr.msk.f32.mxu1 %vm156_vm1, %v11095_v42  ;;  %9205 = vmatprep.mubr.msk.f32.mxu0 %vm156_vm1, %v7612_v28  ;;  %v7616_v42 = vld [vmem:[%s12672_s0 + $0x92] sm:$0xff] }
 0x1e5   :  { %8782 = vmatmul.mubr.msk.f32.gmra.mrb[48].mxu1 %vm156_vm1, %v11108_v44  ;;  %9206 = vmatmul.mubr.msk.f32.gmra.mrb[4].mxu0 %vm156_vm1, %v7613_v39  ;;  %v7617_v44 = vld [vmem:[%s12672_s0 + $0x9a] sm:$0xff] }
 0x1e6   :  { %8784 = vmatprep.mubr.msk.f32.mxu1 %vm156_vm1, %v11113_v46  ;;  %9208 = vmatprep.mubr.msk.f32.mxu0 %vm156_vm1, %v7614_v41  ;;  %v7618_v46 = vld [vmem:[%s12672_s0 + $0xaa] sm:$0xff] }
 0x1e9   :  { %8785 = vmatmul.mubr.msk.f32.gmra.mrb[50].mxu1 %vm156_vm1, %v11126_v48  ;;  %9209 = vmatmul.mubr.msk.f32.gmra.mrb[6].mxu0 %vm156_vm1, %v7615_v58  ;;  %v7619_v48 = vld [vmem:[%s12672_s0 + $0xb2] sm:$0xff] }
 0x1ea   :  { %8787 = vmatprep.mubr.msk.f32.mxu1 %vm156_vm1, %v11131_v50  ;;  %9211 = vmatprep.mubr.msk.f32.mxu0 %vm156_vm1, %v7616_v42  ;;  %v7620_v50 = vld [vmem:[%s12672_s0 + $0xc2] sm:$0xff] }
 0x1ed   :  { %8788 = vmatmul.mubr.msk.f32.gmra.mrb[52].mxu1 %vm156_vm1, %v11144_v52  ;;  %9212 = vmatmul.mubr.msk.f32.gmra.mrb[8].mxu0 %vm156_vm1, %v7617_v44  ;;  %v7621_v52 = vld [vmem:[%s12672_s0 + $0xca] sm:$0xff] }
 0x1ee   :  { %8790 = vmatprep.mubr.msk.f32.mxu1 %vm156_vm1, %v11149_v56  ;;  %9214 = vmatprep.mubr.msk.f32.mxu0 %vm156_vm1, %v7618_v46  ;;  %v7622_v56 = vld [vmem:[%s12672_s0 + $0xda] sm:$0xff] }
 0x1f1   :  { %8791 = vmatmul.mubr.msk.f32.gmra.mrb[54].mxu1 %vm156_vm1, %v11162_v61  ;;  %9215 = vmatmul.mubr.msk.f32.gmra.mrb[10].mxu0 %vm156_vm1, %v7619_v48  ;;  %v7623_v61 = vld [vmem:[%s12672_s0 + $0xe2] sm:$0xff] }
 0x1f2   :  { %8793 = vmatprep.mubr.msk.f32.mxu1 %vm156_vm1, %v11167_v2  ;;  %9217 = vmatprep.mubr.msk.f32.mxu0 %vm156_vm1, %v7620_v50  ;;  %v7624_v2 = vld [vmem:[%s12672_s0 + $0xf2] sm:$0xff] }
 0x1f5   :  { %8794 = vmatmul.mubr.msk.f32.gmra.mrb[56].mxu1 %vm156_vm1, %v11180_v6  ;;  %9218 = vmatmul.mubr.msk.f32.gmra.mrb[12].mxu0 %vm156_vm1, %v7621_v52  ;;  %v7625_v6 = vld [vmem:[%s12672_s0 + $0xfa] sm:$0xff] }
 0x1f6   :  { %8796 = vmatprep.mubr.msk.f32.mxu1 %vm156_vm1, %v11185_v10  ;;  %9220 = vmatprep.mubr.msk.f32.mxu0 %vm156_vm1, %v7622_v56  ;;  %v7626_v10 = vld [vmem:[%s12672_s0 + $0x10a] sm:$0xff] }
 0x1f9   :  { %8797 = vmatmul.mubr.msk.f32.gmra.mrb[58].mxu1 %vm156_vm1, %v11198_v14  ;;  %9221 = vmatmul.mubr.msk.f32.gmra.mrb[14].mxu0 %vm156_vm1, %v7623_v61  ;;  %v7627_v14 = vld [vmem:[%s12672_s0 + $0x112] sm:$0xff] }
 0x1fa   :  { %8799 = vmatprep.mubr.msk.f32.mxu1 %vm156_vm1, %v11203_v18  ;;  %9223 = vmatprep.mubr.msk.f32.mxu0 %vm156_vm1, %v7624_v2  ;;  %v7628_v18 = vld [vmem:[%s12672_s0 + $0x122] sm:$0xff] }
 0x1fd   :  { %8800 = vmatmul.mubr.msk.f32.gmra.mrb[60].mxu1 %vm156_vm1, %v11216_v22  ;;  %9224 = vmatmul.mubr.msk.f32.gmra.mrb[16].mxu0 %vm156_vm1, %v7625_v6  ;;  %v7629_v22 = vld [vmem:[%s12672_s0 + $0x12a] sm:$0xff] }
 0x1fe   :  { %8802 = vmatprep.mubr.msk.f32.mxu1 %vm156_vm1, %v11407_v29  ;;  %9226 = vmatprep.mubr.msk.f32.mxu0 %vm156_vm1, %v7626_v10  ;;  %v7630_v29 = vld [vmem:[%s12672_s0 + $0x13a] sm:$0xff] }
 0x201   :  { %8803 = vmatmul.mubr.msk.f32.gmra.mrb[62].mxu1 %vm156_vm1, %v11420_v34  ;;  %9227 = vmatmul.mubr.msk.f32.gmra.mrb[18].mxu0 %vm156_vm1, %v7627_v14  ;;  %v7631_v34 = vld [vmem:[%s12672_s0 + $0x142] sm:$0xff] }
 0x202   :  { %8873 = vmatprep.mubr.msk.f32.mxu1 %vm156_vm1, %v11744_v24  ;;  %9229 = vmatprep.mubr.msk.f32.mxu0 %vm156_vm1, %v7628_v18  ;;  %v7632_v24 = vld [vmem:[%s12672_s0 + $0x152] sm:$0xff] }
 0x205   :  { %8874 = vmatmul.mubr.msk.f32.vlgmr.msra.gmra.mrb[44].mxu1 %vm156_vm1, %v11757_v32  ;;  %9230 = vmatmul.mubr.msk.f32.gmra.mrb[20].mxu0 %vm156_vm1, %v7629_v22  ;;  %v7633_v32 = vld [vmem:[%s12672_s0 + $0x15a] sm:$0xff] }
 0x206   :  { %8876 = vmatprep.mubr.msk.f32.mxu1 %vm156_vm1, %v11765_v37  ;;  %9232 = vmatprep.mubr.msk.f32.mxu0 %vm156_vm1, %v7630_v29  ;;  %v7635_v37 = vld [vmem:[%s12672_s0 + $0x172] sm:$0xff] }
 0x209   :  { %8877 = vmatmul.mubr.msk.f32.gmra.mrb[46].mxu1 %vm156_vm1, %v11779_v53  ;;  %9233 = vmatmul.mubr.msk.f32.gmra.mrb[22].mxu0 %vm156_vm1, %v7631_v34  ;;  %v7637_v53 = vld [vmem:[%s12672_s0 + $0x18a] sm:$0xff] }
 0x20a   :  { %8879 = vmatprep.mubr.msk.f32.mxu1 %vm156_vm1, %v11787_v63  ;;  %9235 = vmatprep.mubr.msk.f32.mxu0 %vm156_vm1, %v7632_v24  ;;  %v7639_v63 = vld [vmem:[%s12672_s0 + $0x1a2] sm:$0xff] }
 0x20d   :  { %8880 = vmatmul.mubr.msk.f32.gmra.mrb[48].mxu1 %vm156_vm1, %v11801_v49  ;;  %9236 = vmatmul.mubr.msk.f32.gmra.mrb[24].mxu0 %vm156_vm1, %v7633_v32  ;;  %v7641_v49 = vld [vmem:[%s12672_s0 + $0x1ea] sm:$0xff] }
 0x20e   :  { %8882 = vmatprep.mubr.msk.f32.mxu1 %vm156_vm1, %v11809_v36  ;;  %9238 = vmatprep.mubr.msk.f32.mxu0 %vm156_vm1, %v7634_v35  ;;  %v7643_v36 = vld [vmem:[%s12672_s0 + $0x202] sm:$0xff] }
 0x211   :  { %8883 = vmatmul.mubr.msk.f32.gmra.mrb[50].mxu1 %vm156_vm1, %v11823_v30  ;;  %9239 = vmatmul.mubr.msk.f32.gmra.mrb[26].mxu0 %vm156_vm1, %v7635_v37  ;;  %v7645_v30 = vld [vmem:[%s12672_s0 + $0x21a] sm:$0xff] }
 0x212   :  { %8885 = vmatprep.mubr.msk.f32.mxu1 %vm156_vm1, %v11828_v55  ;;  %9241 = vmatprep.mubr.msk.f32.mxu0 %vm156_vm1, %v7636_v51  ;;  %v7646_v55 = vld [vmem:[%s12672_s0 + $0x22a] sm:$0xff]  ;;  %v6418_v51 = vlaneseq }
 0x215   :  { %8886 = vmatmul.mubr.msk.f32.gmra.mrb[52].mxu1 %vm156_vm1, %v11840_v57  ;;  %9242 = vmatmul.mubr.msk.f32.gmra.mrb[28].mxu0 %vm156_vm1, %v7637_v53  ;;  %v7647_v57 = vld [vmem:[%s12672_s0 + $0x232] sm:$0xff] }
 0x216   :  { %8888 = vmatprep.mubr.msk.f32.mxu1 %vm156_vm1, %v11848_v62  ;;  %9244 = vmatprep.mubr.msk.f32.mxu0 %vm156_vm1, %v7638_v4  ;;  %v7649_v62 = vld [vmem:[%s12672_s0 + $0x24a] sm:$0xff] }
 0x219   :  { %8889 = vmatmul.mubr.msk.f32.gmra.mrb[54].mxu1 %vm156_vm1, %v11863_v0  ;;  %9245 = vmatmul.mubr.msk.f32.gmra.mrb[30].mxu0 %vm156_vm1, %v7639_v63  ;;  %v7651_v0 = vld [vmem:[%s12672_s0 + $0x262] sm:$0xff]  ;;  %v6424_v63 = vshrl.u32 %v6418_v51, 7 }
 0x21a   :  { %8891 = vmatprep.mubr.msk.f32.mxu1 %vm156_vm1, %v11871_v3  ;;  %9247 = vmatprep.mubr.msk.f32.mxu0 %vm156_vm1, %v7640_v45  ;;  %v7653_v3 = vld [vmem:[%s12672_s0 + $0x27a] sm:$0xff]  ;;  %v6419_v45 = vand.u32 127, %v6418_v51 }
 0x21d   :  { %8892 = vmatmul.mubr.msk.f32.gmra.mrb[56].mxu1 %vm156_vm1, %v11885_v7  ;;  %9248 = vmatmul.mubr.msk.f32.gmra.mrb[32].mxu0 %vm156_vm1, %v7641_v49  ;;  %v7655_v7 = vld [vmem:[%s12672_s0 + $0x292] sm:$0xff]  ;;  %v6425_v49 = vmul.u32 256, %v6424_v63 }
 0x21e   :  { %8894 = vmatprep.mubr.msk.f32.mxu1 %vm156_vm1, %v11893_v11  ;;  %9250 = vmatprep.mubr.msk.f32.mxu0 %vm156_vm1, %v7642_v38  ;;  %v7657_v11 = vld [vmem:[%s12672_s0 + $0x2aa] sm:$0xff] }
 0x21f   :  { %vm6426_vm5 = vcmp.ge.s32.totalorder %v6419_v45, %v6425_v49 }
 0x221   :  { %8895 = vmatmul.mubr.msk.f32.gmra.mrb[58].mxu1 %vm156_vm1, %v11907_v15  ;;  %9251 = vmatmul.mubr.msk.f32.gmra.mrb[34].mxu0 %vm156_vm1, %v7643_v36  ;;  %v7659_v15 = vld [vmem:[%s12672_s0 + $0x2c2] sm:$0xff] }
 0x222   :  { %8897 = vmatprep.mubr.msk.f32.mxu1 %vm156_vm1, %v11915_v19  ;;  %9253 = vmatprep.mubr.msk.f32.mxu0 %vm156_vm1, %v7644_v26  ;;  %v7661_v19 = vld [vmem:[%s12672_s0 + $0x2da] sm:$0xff]  ;;  %v6420_v26 = vadd.s32 128, %v6419_v45 }
 0x224   :  { %vm6427_vm2 = vcmp.ge.s32.totalorder %v6420_v26, %v6425_v49 }
 0x225   :  { %8898 = vmatmul.mubr.msk.f32.gmra.mrb[60].mxu1 %vm156_vm1, %v11929_v23  ;;  %9254 = vmatmul.mubr.msk.f32.gmra.mrb[36].mxu0 %vm156_vm1, %v7645_v30  ;;  %v7663_v23 = vld [vmem:[%s12672_s0 + $0x2f2] sm:$0xff]  ;;  %v6430_v30 = vadd.s32 256, %v6425_v49 }
 0x226   :  { %8900 = vmatprep.mubr.msk.f32.mxu1 %vm156_vm1, %v11937_v27  ;;  %9256 = vmatprep.mubr.msk.f32.mxu0 %vm156_vm1, %v7646_v55  ;;  %v7665_v27 = vld [vmem:[%s12672_s0 + $0x30a] sm:$0xff] }
 0x227   :  { %vm6432_vm3 = vcmp.lt.s32.totalorder %v6420_v26, %v6430_v30  ;;  %vm6431_vm6 = vcmp.lt.s32.totalorder %v6419_v45, %v6430_v30  ;;  %v6421_v26 = vadd.s32 256, %v6419_v45 }
 0x228   :  { %vm6436_vm4 = vmand %vm6427_vm2, %vm6432_vm3  ;;  %vm6762_vm2 = vcmask 288000  }
 0x229   :  { %8901 = vmatmul.mubr.msk.f32.gmra.mrb[62].mxu1 %vm156_vm1, %v11951_v33  ;;  %9257 = vmatmul.mubr.msk.f32.gmra.mrb[38].mxu0 %vm156_vm1, %v7647_v57  ;;  %v7667_v33 = vld [vmem:[%s12672_s0 + $0x322] sm:$0xff]  ;;  %vm12375_vm7 = vmand %vm6426_vm5, %vm6431_vm6  ;;  %vm6428_vm11 = vcmp.ge.s32.totalorder %v6421_v26, %v6425_v49  ;;  %vm6433_vm12 = vcmp.lt.s32.totalorder %v6421_v26, %v6430_v30 }
 0x22a   :  { %9259 = vmatprep.mubr.msk.f32.mxu0 %vm156_vm1, %v7648_v60  ;;  %v12718_v60 = vmov 1.0   ;;  %vm12418_vm13 = vmand %vm6428_vm11, %vm6433_vm12 }
 0x22b   :  { %7742 = vmatprep.mubr.msk.f32.mxu1 %vm6436_vm4, %v12718_v60 }
 0x22d   :  { %9260 = vmatmul.mubr.msk.f32.gmra.mrb[40].mxu0 %vm156_vm1, %v7649_v62 }
 0x22e   :  { %9262 = vmatprep.mubr.msk.f32.mxu0 %vm156_vm1, %v7650_v1 }
 0x231   :  { %9263 = vmatmul.mubr.msk.f32.gmra.mrb[42].mxu0 %vm156_vm1, %v7651_v0 }
 0x232   :  { %9265 = vmatprep.mubr.msk.f32.mxu0 %vm156_vm1, %v7652_v54 }
 0x235   :  { %9266 = vmatmul.mubr.msk.f32.gmra.mrb[44].mxu0 %vm156_vm1, %v7653_v3 }
 0x236   :  { %9268 = vmatprep.mubr.msk.f32.mxu0 %vm156_vm1, %v7654_v5 }
 0x239   :  { %9269 = vmatmul.mubr.msk.f32.gmra.mrb[46].mxu0 %vm156_vm1, %v7655_v7 }
 0x23a   :  { %9271 = vmatprep.mubr.msk.f32.mxu0 %vm156_vm1, %v7656_v9 }
 0x23d   :  { %9272 = vmatmul.mubr.msk.f32.gmra.mrb[48].mxu0 %vm156_vm1, %v7657_v11 }
 0x23e   :  { %9274 = vmatprep.mubr.msk.f32.mxu0 %vm156_vm1, %v7658_v13 }
 0x241   :  { %9275 = vmatmul.mubr.msk.f32.gmra.mrb[50].mxu0 %vm156_vm1, %v7659_v15 }
 0x242   :  { %9277 = vmatprep.mubr.msk.f32.mxu0 %vm156_vm1, %v7660_v17 }
 0x245   :  { %9278 = vmatmul.mubr.msk.f32.gmra.mrb[52].mxu0 %vm156_vm1, %v7661_v19  ;;  %v12402_v19 = vld [vmem:[%s12673_s2] ss:$0 sm:$0xff] }
 0x246   :  { %9280 = vmatprep.mubr.msk.f32.mxu0 %vm156_vm1, %v7662_v21 }
 0x249   :  { %9281 = vmatmul.mubr.msk.f32.gmra.mrb[54].mxu0 %vm156_vm1, %v7663_v23 }
 0x24a   :  { %9283 = vmatprep.mubr.msk.f32.mxu0 %vm156_vm1, %v7664_v25 }
 0x24d   :  { %9284 = vmatmul.mubr.msk.f32.gmra.mrb[56].mxu0 %vm156_vm1, %v7665_v27 }
 0x24e   :  { %9286 = vmatprep.mubr.msk.f32.mxu0 %vm156_vm1, %v7666_v31 }
 0x251   :  { %9287 = vmatmul.mubr.msk.f32.gmra.mrb[58].mxu0 %vm156_vm1, %v7667_v33 }
 0x252   :  { %9289 = vmatprep.mubr.msk.f32.mxu0 %vm156_vm1, %v7668_v43 }
 0x255   :  { %9290 = vmatmul.mubr.msk.f32.gmra.mrb[60].mxu0 %vm156_vm1, %v7669_v47 }
 0x256   :  { %9292 = vmatprep.mubr.msk.f32.mxu0 %vm156_vm1, %v7670_v59 }
 0x258   :  { %v8711_v12 = vpop.f32.mrb[0].mxu1 }
 0x259   :  { %v12307_v16 = vpop.f32.mrb[1].mxu1  ;;  %9293 = vmatmul.mubr.msk.f32.gmra.mrb[62].mxu0 %vm156_vm1, %v7671_v8  ;;  %v6422_v8 = vadd.s32 384, %v6419_v45  ;;  %vm6756_vm1 = vcmask 254976  }
 0x25b   :  { %vm6429_vm8 = vcmp.ge.s32.totalorder %v6422_v8, %v6425_v49  ;;  %vm6434_vm9 = vcmp.lt.s32.totalorder %v6422_v8, %v6430_v30 }
 0x25c   :  { %v12310_v20 = vpop.f32.mrb[2].mxu1  ;;  %vm12413_vm10 = vmand %vm6429_vm8, %vm6434_vm9 }
 0x25d   :  { %v12312_v40 = vpop.f32.mrb[3].mxu1 }
 0x260   :  { %v12314_v28 = vpop.f32.mrb[4].mxu1 }
 0x261   :  { %v12316_v39 = vpop.f32.mrb[5].mxu1 }
 0x264   :  { %v12318_v41 = vpop.f32.mrb[6].mxu1 }
 0x265   :  { %v12320_v58 = vpop.f32.mrb[7].mxu1 }
 0x268   :  { %v12322_v42 = vpop.f32.mrb[8].mxu1 }
 0x269   :  { %v12324_v44 = vpop.f32.mrb[9].mxu1 }
 0x26c   :  { %v12326_v46 = vpop.f32.mrb[10].mxu1 }
 0x26d   :  { %v12328_v48 = vpop.f32.mrb[11].mxu1 }
 0x270   :  { %v12330_v50 = vpop.f32.mrb[12].mxu1 }
 0x271   :  { %v12332_v52 = vpop.f32.mrb[13].mxu1 }
 0x274   :  { %v12334_v56 = vpop.f32.mrb[14].mxu1 }
 0x275   :  { %v12336_v61 = vpop.f32.mrb[15].mxu1 }
 0x278   :  { %v12338_v2 = vpop.f32.mrb[16].mxu1 }
 0x279   :  { %v12340_v6 = vpop.f32.mrb[17].mxu1 }
 0x27c   :  { %v12342_v10 = vpop.f32.mrb[18].mxu1 }
 0x27d   :  { %v12344_v14 = vpop.f32.mrb[19].mxu1 }
 0x280   :  { %v12346_v18 = vpop.f32.mrb[20].mxu1 }
 0x281   :  { %v12348_v22 = vpop.f32.mrb[21].mxu1 }
 0x284   :  { %v12350_v29 = vpop.f32.mrb[22].mxu1 }
 0x285   :  { %v12352_v34 = vpop.f32.mrb[23].mxu1 }
 0x288   :  { %v12354_v24 = vpop.f32.mrb[24].mxu1 }
 0x289   :  { %v12356_v32 = vpop.f32.mrb[25].mxu1 }
 0x28c   :  { %v12358_v35 = vpop.f32.mrb[26].mxu1 }
 0x28d   :  { %v12360_v37 = vpop.f32.mrb[27].mxu1 }
 0x290   :  { %v12362_v53 = vpop.f32.mrb[28].mxu1 }
 0x291   :  { %v12364_v4 = vpop.f32.mrb[29].mxu1 }
 0x294   :  { %v12366_v38 = vpop.f32.mrb[30].mxu1 }
 0x295   :  { %v12368_v36 = vpop.f32.mrb[31].mxu1 }
 0x298   :  { %v12370_v55 = vpop.f32.mrb[32].mxu1 }
 0x299   :  { %v12372_v57 = vpop.f32.mrb[33].mxu1 }
 0x29c   :  { %v12379_v1 = vpop.f32.mrb[34].mxu1 }
 0x29d   :  { %v12381_v0 = vpop.f32.mrb[35].mxu1 }
 0x2a0   :  { %v12383_v54 = vpop.f32.mrb[36].mxu1 }
 0x2a1   :  { %v12385_v3 = vpop.f32.mrb[37].mxu1 }
 0x2a4   :  { %v12387_v5 = vpop.f32.mrb[38].mxu1 }
 0x2a5   :  { %v12389_v7 = vpop.f32.mrb[39].mxu1 }
 0x2a8   :  { %v12391_v9 = vpop.f32.mrb[40].mxu1 }
 0x2a9   :  { %v12393_v11 = vpop.f32.mrb[41].mxu1 }
 0x2ac   :  { %v12395_v13 = vpop.f32.mrb[42].mxu1 }
 0x2ad   :  { %v12397_v15 = vpop.f32.mrb[43].mxu1 }
 0x2b0   :  { %v9201_v17 = vpop.f32.mrb[0].mxu0 }
 0x2b1   :  { %v9388_v21 = vadd.f32 %v9201_v17, %v8711_v12  ;;  %v5900_v23 = vpop.f32.mrb[1].mxu0 }
 0x2b2   :  { %v9389_v25 = vadd.f32 %v5900_v23, %v12307_v16 }
 0x2b3   :  { %v6291_v27 = vadd.f32 %v9388_v21, %v12402_v19 }
 0x2b4   :  { %v6290_v31 = vadd.f32 %v9389_v25, %v12402_v19  ;;  %v9204_v33 = vpop.f32.mrb[2].mxu0 }
 0x2b5   :  { %v6355_v43 = vmax.f32 %v6291_v27, 0.0  ;;  %v9390_v47 = vadd.f32 %v9204_v33, %v12310_v20  ;;  %v5910_v59 = vpop.f32.mrb[3].mxu0 }
 0x2b6   :  { %v6354_v51 = vmax.f32 %v6290_v31, 0.0  ;;  %v9391_v63 = vadd.f32 %v5910_v59, %v12312_v40 }
 0x2b7   :  { %v6293_v60 = vadd.f32 %v9390_v47, %v12402_v19 }
 0x2b8   :  { %v12410_v12 = vpack.c.bf16 %v6355_v43, %v6354_v51  ;;  %v6292_v16 = vadd.f32 %v9391_v63, %v12402_v19  ;;  %v9207_v17 = vpop.f32.mrb[4].mxu0 }
 0x2b9   :  { %v6357_v20 = vmax.f32 %v6293_v60, 0.0  ;;  %v9392_v23 = vadd.f32 %v9207_v17, %v12314_v28  ;;  %v5920_v40 = vpop.f32.mrb[5].mxu0 }
 0x2ba   :  { %v6356_v25 = vmax.f32 %v6292_v16, 0.0  ;;  %v9393_v27 = vadd.f32 %v5920_v40, %v12316_v39 }
 0x2bb   :  { %v6295_v31 = vadd.f32 %v9392_v23, %v12402_v19 }
 0x2bc   :  { %v12424_v33 = vpack.c.bf16 %v6357_v20, %v6356_v25  ;;  %v6294_v43 = vadd.f32 %v9393_v27, %v12402_v19  ;;  %v9210_v47 = vpop.f32.mrb[6].mxu0 }
 0x2bd   :  { %v6359_v49 = vmax.f32 %v6295_v31, 0.0  ;;  %v9394_v30 = vadd.f32 %v9210_v47, %v12318_v41  ;;  %v5930_v60 = vpop.f32.mrb[7].mxu0 }
 0x2be   :  { %v6358_v28 = vmax.f32 %v6294_v43, 0.0  ;;  %v9395_v59 = vadd.f32 %v5930_v60, %v12320_v58 }
 0x2bf   :  { %v6297_v8 = vadd.f32 %v9394_v30, %v12402_v19 }
 0x2c0   :  { %v12430_v51 = vpack.c.bf16 %v6359_v49, %v6358_v28  ;;  %v6296_v39 = vadd.f32 %v9395_v59, %v12402_v19  ;;  %v9213_v63 = vpop.f32.mrb[8].mxu0 }
 0x2c1   :  { %v6361_v26 = vmax.f32 %v6297_v8, 0.0  ;;  %v9396_v16 = vadd.f32 %v9213_v63, %v12322_v42  ;;  %v5940_v17 = vpop.f32.mrb[9].mxu0 }
 0x2c2   :  { %v6360_v20 = vmax.f32 %v6296_v39, 0.0  ;;  %v9397_v23 = vadd.f32 %v5940_v17, %v12324_v44 }
 0x2c3   :  { %v6299_v41 = vadd.f32 %v9396_v16, %v12402_v19 }
 0x2c4   :  { %v12436_v40 = vpack.c.bf16 %v6361_v26, %v6360_v20  ;;  %v6298_v58 = vadd.f32 %v9397_v23, %v12402_v19  ;;  %v9216_v25 = vpop.f32.mrb[10].mxu0 }
 0x2c5   :  { %v6363_v27 = vmax.f32 %v6299_v41, 0.0  ;;  %v9398_v31 = vadd.f32 %v9216_v25, %v12326_v46  ;;  %v5950_v43 = vpop.f32.mrb[11].mxu0 }
 0x2c6   :  { %v6362_v47 = vmax.f32 %v6298_v58, 0.0  ;;  %v9399_v49 = vadd.f32 %v5950_v43, %v12328_v48 }
 0x2c7   :  { %v6301_v42 = vadd.f32 %v9398_v31, %v12402_v19 }
 0x2c8   :  { %v12442_v30 = vpack.c.bf16 %v6363_v27, %v6362_v47  ;;  %v6300_v44 = vadd.f32 %v9399_v49, %v12402_v19  ;;  %v9219_v60 = vpop.f32.mrb[12].mxu0 }
 0x2c9   :  { %v6365_v28 = vmax.f32 %v6301_v42, 0.0  ;;  %v9400_v59 = vadd.f32 %v9219_v60, %v12330_v50  ;;  %v5960_v8 = vpop.f32.mrb[13].mxu0 }
 0x2ca   :  { %v6364_v39 = vmax.f32 %v6300_v44, 0.0  ;;  %v9401_v63 = vadd.f32 %v5960_v8, %v12332_v52 }
 0x2cb   :  { %v6303_v46 = vadd.f32 %v9400_v59, %v12402_v19 }
 0x2cc   :  { %v12448_v26 = vpack.c.bf16 %v6365_v28, %v6364_v39  ;;  %v6302_v48 = vadd.f32 %v9401_v63, %v12402_v19  ;;  %v9222_v16 = vpop.f32.mrb[14].mxu0 }
 0x2cd   :  { %v6367_v17 = vmax.f32 %v6303_v46, 0.0  ;;  %v9402_v20 = vadd.f32 %v9222_v16, %v12334_v56  ;;  %v5970_v23 = vpop.f32.mrb[15].mxu0 }
 0x2ce   :  { %v6366_v41 = vmax.f32 %v6302_v48, 0.0  ;;  %v9403_v58 = vadd.f32 %v5970_v23, %v12336_v61 }
 0x2cf   :  { %v6305_v50 = vadd.f32 %v9402_v20, %v12402_v19 }
 0x2d0   :  { %v12454_v25 = vpack.c.bf16 %v6367_v17, %v6366_v41  ;;  %v6304_v52 = vadd.f32 %v9403_v58, %v12402_v19  ;;  %v9225_v27 = vpop.f32.mrb[16].mxu0 }
 0x2d1   :  { %v6369_v31 = vmax.f32 %v6305_v50, 0.0  ;;  %v9404_v43 = vadd.f32 %v9225_v27, %v12338_v2  ;;  %v5980_v47 = vpop.f32.mrb[17].mxu0 }
 0x2d2   :  { %v6368_v49 = vmax.f32 %v6304_v52, 0.0  ;;  %v9405_v42 = vadd.f32 %v5980_v47, %v12340_v6 }
 0x2d3   :  { %v6307_v56 = vadd.f32 %v9404_v43, %v12402_v19 }
 0x2d4   :  { %v12460_v44 = vpack.c.bf16 %v6369_v31, %v6368_v49  ;;  %v6306_v61 = vadd.f32 %v9405_v42, %v12402_v19  ;;  %v9228_v60 = vpop.f32.mrb[18].mxu0 }
 0x2d5   :  { %v6371_v28 = vmax.f32 %v6307_v56, 0.0  ;;  %v9406_v59 = vadd.f32 %v9228_v60, %v12342_v10  ;;  %v5990_v8 = vpop.f32.mrb[19].mxu0 }
 0x2d6   :  { %v6370_v39 = vmax.f32 %v6306_v61, 0.0  ;;  %v9407_v63 = vadd.f32 %v5990_v8, %v12344_v14 }
 0x2d7   :  { %v6309_v2 = vadd.f32 %v9406_v59, %v12402_v19 }
 0x2d8   :  { %v6308_v46 = vadd.f32 %v9407_v63, %v12402_v19  ;;  %v12467_v48 = vpop.f32.mrb[44].mxu1  ;;  %v9231_v6 = vpop.f32.mrb[20].mxu0  ;;  %v9313_v16 = vpack.c.bf16 %v6371_v28, %v6370_v39 }
 0x2d9   :  { %v6373_v17 = vmax.f32 %v6309_v2, 0.0  ;;  %v9408_v20 = vadd.f32 %v9231_v6, %v12346_v18  ;;  %v12470_v23 = vpop.f32.mrb[45].mxu1  ;;  %v6000_v41 = vpop.f32.mrb[21].mxu0 }
 0x2da   :  { %v6372_v58 = vmax.f32 %v6308_v46, 0.0  ;;  %v9409_v10 = vadd.f32 %v6000_v41, %v12348_v22  ;;  %9314 = vmatprep.subr.bf16.mxu1 %v9313_v16 }
 0x2db   :  { %v6311_v14 = vadd.f32 %v9408_v20, %v12402_v19  ;;  %9316 = vmatpush3.bf16.msra.mxu1 %v12410_v12 }
 0x2dc   :  { %v6310_v50 = vadd.f32 %v9409_v10, %v12402_v19  ;;  %v12476_v52 = vpop.f32.mrb[46].mxu1  ;;  %v9234_v27 = vpop.f32.mrb[22].mxu0  ;;  %v9317_v31 = vpack.c.bf16 %v6373_v17, %v6372_v58 }
 0x2dd   :  { %v6375_v43 = vmax.f32 %v6311_v14, 0.0  ;;  %v9410_v18 = vadd.f32 %v9234_v27, %v12350_v29  ;;  %v12479_v47 = vpop.f32.mrb[47].mxu1  ;;  %v6010_v49 = vpop.f32.mrb[23].mxu0 }
 0x2de   :  { %v6374_v42 = vmax.f32 %v6310_v50, 0.0  ;;  %v9411_v22 = vadd.f32 %v6010_v49, %v12352_v34  ;;  %9318 = vmatprep.subr.bf16.mxu1 %v9317_v31 }
 0x2df   :  { %v6313_v56 = vadd.f32 %v9410_v18, %v12402_v19  ;;  %9320 = vmatpush3.bf16.msra.mxu1 %v12424_v33 }
 0x2e0   :  { %v6312_v12 = vadd.f32 %v9411_v22, %v12402_v19  ;;  %v12485_v61 = vpop.f32.mrb[48].mxu1  ;;  %v9237_v60 = vpop.f32.mrb[24].mxu0  ;;  %v9321_v28 = vpack.c.bf16 %v6375_v43, %v6374_v42 }
 0x2e1   :  { %v6377_v59 = vmax.f32 %v6313_v56, 0.0  ;;  %v9412_v29 = vadd.f32 %v9237_v60, %v12354_v24  ;;  %v12488_v8 = vpop.f32.mrb[49].mxu1  ;;  %v6020_v39 = vpop.f32.mrb[25].mxu0 }
 0x2e2   :  { %v6376_v63 = vmax.f32 %v6312_v12, 0.0  ;;  %v9413_v34 = vadd.f32 %v6020_v39, %v12356_v32  ;;  %9322 = vmatprep.subr.bf16.mxu1 %v9321_v28 }
 0x2e3   :  { %v6315_v2 = vadd.f32 %v9412_v29, %v12402_v19  ;;  %9324 = vmatpush3.bf16.msra.mxu1 %v12430_v51 }
 0x2e4   :  { %v6314_v33 = vadd.f32 %v9413_v34, %v12402_v19  ;;  %v12494_v46 = vpop.f32.mrb[50].mxu1  ;;  %v9240_v6 = vpop.f32.mrb[26].mxu0  ;;  %v9325_v16 = vpack.c.bf16 %v6377_v59, %v6376_v63 }
 0x2e5   :  { %v6379_v17 = vmax.f32 %v6315_v2, 0.0  ;;  %v9414_v24 = vadd.f32 %v9240_v6, %v12358_v35  ;;  %v12497_v20 = vpop.f32.mrb[51].mxu1  ;;  %v6030_v41 = vpop.f32.mrb[27].mxu0 }
 0x2e6   :  { %v6378_v58 = vmax.f32 %v6314_v33, 0.0  ;;  %v9415_v32 = vadd.f32 %v6030_v41, %v12360_v37  ;;  %9326 = vmatprep.subr.bf16.mxu1 %v9325_v16 }
 0x2e7   :  { %v6317_v10 = vadd.f32 %v9414_v24, %v12402_v19  ;;  %9328 = vmatpush3.bf16.msra.mxu1 %v12436_v40 }
 0x2e8   :  { %v6316_v51 = vadd.f32 %v9415_v32, %v12402_v19  ;;  %v12503_v14 = vpop.f32.mrb[52].mxu1  ;;  %v9243_v50 = vpop.f32.mrb[28].mxu0  ;;  %v9329_v27 = vpack.c.bf16 %v6379_v17, %v6378_v58 }
 0x2e9   :  { %v6381_v31 = vmax.f32 %v6317_v10, 0.0  ;;  %v9416_v35 = vadd.f32 %v9243_v50, %v12362_v53  ;;  %v12506_v43 = vpop.f32.mrb[53].mxu1  ;;  %v6040_v18 = vpop.f32.mrb[29].mxu0 }
 0x2ea   :  { %v6380_v49 = vmax.f32 %v6316_v51, 0.0  ;;  %v9417_v37 = vadd.f32 %v6040_v18, %v12364_v4  ;;  %9330 = vmatprep.subr.bf16.mxu1 %v9329_v27 }
 0x2eb   :  { %v6319_v42 = vadd.f32 %v9416_v35, %v12402_v19  ;;  %9332 = vmatpush3.bf16.msra.mxu1 %v12442_v30 }
 0x2ec   :  { %v6318_v40 = vadd.f32 %v9417_v37, %v12402_v19  ;;  %v12512_v22 = vpop.f32.mrb[54].mxu1  ;;  %v9246_v56 = vpop.f32.mrb[30].mxu0  ;;  %v9333_v12 = vpack.c.bf16 %v6381_v31, %v6380_v49 }
 0x2ed   :  { %v6383_v60 = vmax.f32 %v6319_v42, 0.0  ;;  %v9418_v53 = vadd.f32 %v9246_v56, %v12366_v38  ;;  %v12515_v28 = vpop.f32.mrb[55].mxu1  ;;  %v6050_v59 = vpop.f32.mrb[31].mxu0 }
 0x2ee   :  { %v6382_v29 = vmax.f32 %v6318_v40, 0.0  ;;  %v9419_v4 = vadd.f32 %v6050_v59, %v12368_v36  ;;  %9334 = vmatprep.subr.bf16.mxu1 %v9333_v12  ;;  %v12804_v12 = vmov 1.0  }
 0x2ef   :  { %v6321_v39 = vadd.f32 %v9418_v53, %v12402_v19  ;;  %9336 = vmatpush3.bf16.msra.mxu1 %v12448_v26 }
 0x2f0   :  { %v6320_v30 = vadd.f32 %v9419_v4, %v12402_v19  ;;  %v12521_v63 = vpop.f32.mrb[56].mxu1  ;;  %v9249_v34 = vpop.f32.mrb[32].mxu0  ;;  %v9337_v2 = vpack.c.bf16 %v6383_v60, %v6382_v29 }
 0x2f1   :  { %v6385_v33 = vmax.f32 %v6321_v39, 0.0  ;;  %v9420_v38 = vadd.f32 %v9249_v34, %v12370_v55  ;;  %v12524_v6 = vpop.f32.mrb[57].mxu1  ;;  %v6060_v16 = vpop.f32.mrb[33].mxu0 }
 0x2f2   :  { %v6384_v17 = vmax.f32 %v6320_v30, 0.0  ;;  %v9421_v36 = vadd.f32 %v6060_v16, %v12372_v57  ;;  %9338 = vmatprep.subr.bf16.mxu1 %v9337_v2 }
 0x2f3   :  { %v6323_v24 = vadd.f32 %v9420_v38, %v12402_v19  ;;  %9340 = vmatpush3.bf16.msra.mxu1 %v12454_v25 }
 0x2f4   :  { %v6322_v26 = vadd.f32 %v9421_v36, %v12402_v19  ;;  %v12530_v41 = vpop.f32.mrb[58].mxu1  ;;  %v9252_v58 = vpop.f32.mrb[34].mxu0  ;;  %v9341_v32 = vpack.c.bf16 %v6385_v33, %v6384_v17 }
 0x2f5   :  { %v6387_v10 = vmax.f32 %v6323_v24, 0.0  ;;  %v9422_v55 = vadd.f32 %v9252_v58, %v12379_v1  ;;  %v12533_v51 = vpop.f32.mrb[59].mxu1  ;;  %v6070_v50 = vpop.f32.mrb[35].mxu0 }
 0x2f6   :  { %v6386_v27 = vmax.f32 %v6322_v26, 0.0  ;;  %v9423_v57 = vadd.f32 %v6070_v50, %v12381_v0  ;;  %9342 = vmatprep.subr.bf16.mxu1 %v9341_v32 }
 0x2f7   :  { %v6325_v31 = vadd.f32 %v9422_v55, %v12402_v19  ;;  %9344 = vmatpush3.bf16.msra.mxu1 %v12460_v44 }
 0x2f8   :  { %v12538_v25 = vpack.c.bf16 %v6387_v10, %v6386_v27  ;;  %v6324_v35 = vadd.f32 %v9423_v57, %v12402_v19  ;;  %v12541_v18 = vpop.f32.mrb[60].mxu1  ;;  %v9255_v49 = vpop.f32.mrb[36].mxu0 }
 0x2f9   :  { %v6389_v37 = vmax.f32 %v6325_v31, 0.0  ;;  %v9424_v1 = vadd.f32 %v9255_v49, %v12383_v54  ;;  %v12544_v42 = vpop.f32.mrb[61].mxu1  ;;  %v6080_v40 = vpop.f32.mrb[37].mxu0 }
 0x2fa   :  { %v6388_v56 = vmax.f32 %v6324_v35, 0.0  ;;  %v9425_v0 = vadd.f32 %v6080_v40, %v12385_v3  ;;  %7743 = vmatmul.mubr.msk.f32.vlgmr.msra.gmra.mrb[64].mxu1 %vm12375_vm7, %v12804_v12 }
 0x2fb   :  { %v6327_v44 = vadd.f32 %v9424_v1, %v12402_v19  ;;  %7744 = vmatprep.mubr.msk.f32.mxu1 %vm12413_vm10, %v12804_v12 }
 0x2fc   :  { %v12554_v60 = vpack.c.bf16 %v6389_v37, %v6388_v56  ;;  %v6326_v54 = vadd.f32 %v9425_v0, %v12402_v19  ;;  %v12557_v53 = vpop.f32.mrb[62].mxu1  ;;  %v9258_v59 = vpop.f32.mrb[38].mxu0 }
 0x2fd   :  { %v6391_v29 = vmax.f32 %v6327_v44, 0.0  ;;  %v9426_v3 = vadd.f32 %v9258_v59, %v12387_v5  ;;  %v12560_v4 = vpop.f32.mrb[63].mxu1  ;;  %v6090_v62 = vpop.f32.mrb[39].mxu0 }
 0x2fe   :  { %v6390_v39 = vmax.f32 %v6326_v54, 0.0  ;;  %v9427_v30 = vadd.f32 %v6090_v62, %v12389_v7 }
 0x2ff   :  { %v6329_v34 = vadd.f32 %v9426_v3, %v12402_v19 }
 0x300   :  { %v12564_v21 = vpack.c.bf16 %v6391_v29, %v6390_v39  ;;  %v6328_v2 = vadd.f32 %v9427_v30, %v12402_v19  ;;  %v9261_v33 = vpop.f32.mrb[40].mxu0 }
 0x301   :  { %v6393_v38 = vmax.f32 %v6329_v34, 0.0  ;;  %v9428_v16 = vadd.f32 %v9261_v33, %v12391_v9  ;;  %v6100_v17 = vpop.f32.mrb[41].mxu0 }
 0x302   :  { %v6392_v36 = vmax.f32 %v6328_v2, 0.0  ;;  %v9429_v5 = vadd.f32 %v6100_v17, %v12393_v11 }
 0x303   :  { %v6331_v24 = vadd.f32 %v9428_v16, %v12402_v19 }
 0x304   :  { %v12570_v26 = vpack.c.bf16 %v6393_v38, %v6392_v36  ;;  %v6330_v7 = vadd.f32 %v9429_v5, %v12402_v19  ;;  %v9264_v58 = vpop.f32.mrb[42].mxu0 }
 0x305   :  { %v6395_v32 = vmax.f32 %v6331_v24, 0.0  ;;  %v9430_v10 = vadd.f32 %v9264_v58, %v12395_v13  ;;  %v6110_v55 = vpop.f32.mrb[43].mxu0 }
 0x306   :  { %v6394_v50 = vmax.f32 %v6330_v7, 0.0  ;;  %v9431_v27 = vadd.f32 %v6110_v55, %v12397_v15 }
 0x307   :  { %v6333_v9 = vadd.f32 %v9430_v10, %v12402_v19 }
 0x308   :  { %v12576_v57 = vpack.c.bf16 %v6395_v32, %v6394_v50  ;;  %v6332_v11 = vadd.f32 %v9431_v27, %v12402_v19  ;;  %v9267_v31 = vpop.f32.mrb[44].mxu0 }
 0x309   :  { %v6397_v35 = vmax.f32 %v6333_v9, 0.0  ;;  %v9432_v49 = vadd.f32 %v9267_v31, %v12467_v48  ;;  %v6120_v37 = vpop.f32.mrb[45].mxu0 }
 0x30a   :  { %v6396_v1 = vmax.f32 %v6332_v11, 0.0  ;;  %v9433_v40 = vadd.f32 %v6120_v37, %v12470_v23 }
 0x30b   :  { %v6335_v13 = vadd.f32 %v9432_v49, %v12402_v19 }
 0x30c   :  { %v12582_v56 = vpack.c.bf16 %v6397_v35, %v6396_v1  ;;  %v6334_v15 = vadd.f32 %v9433_v40, %v12402_v19  ;;  %v9270_v0 = vpop.f32.mrb[46].mxu0 }
 0x30d   :  { %v6399_v44 = vmax.f32 %v6335_v13, 0.0  ;;  %v9434_v54 = vadd.f32 %v9270_v0, %v12476_v52  ;;  %v6130_v59 = vpop.f32.mrb[47].mxu0 }
 0x30e   :  { %v6398_v29 = vmax.f32 %v6334_v15, 0.0  ;;  %v9435_v3 = vadd.f32 %v6130_v59, %v12479_v47 }
 0x30f   :  { %v6337_v48 = vadd.f32 %v9434_v54, %v12402_v19 }
 0x310   :  { %v12588_v62 = vpack.c.bf16 %v6399_v44, %v6398_v29  ;;  %v6336_v23 = vadd.f32 %v9435_v3, %v12402_v19  ;;  %v9273_v39 = vpop.f32.mrb[48].mxu0 }
 0x311   :  { %v6401_v30 = vmax.f32 %v6337_v48, 0.0  ;;  %v9436_v34 = vadd.f32 %v9273_v39, %v12485_v61  ;;  %v6140_v2 = vpop.f32.mrb[49].mxu0 }
 0x312   :  { %v6400_v33 = vmax.f32 %v6336_v23, 0.0  ;;  %v9437_v38 = vadd.f32 %v6140_v2, %v12488_v8 }
 0x313   :  { %v6339_v52 = vadd.f32 %v9436_v34, %v12402_v19 }
 0x314   :  { %v12594_v16 = vpack.c.bf16 %v6401_v30, %v6400_v33  ;;  %v6338_v47 = vadd.f32 %v9437_v38, %v12402_v19  ;;  %v9276_v17 = vpop.f32.mrb[50].mxu0 }
 0x315   :  { %v6403_v36 = vmax.f32 %v6339_v52, 0.0  ;;  %v9438_v5 = vadd.f32 %v9276_v17, %v12494_v46  ;;  %v6150_v24 = vpop.f32.mrb[51].mxu0 }
 0x316   :  { %v6402_v7 = vmax.f32 %v6338_v47, 0.0  ;;  %v9439_v58 = vadd.f32 %v6150_v24, %v12497_v20 }
 0x317   :  { %v6341_v61 = vadd.f32 %v9438_v5, %v12402_v19 }
 0x318   :  { %v6340_v32 = vadd.f32 %v9439_v58, %v12402_v19  ;;  %v9279_v10 = vpop.f32.mrb[52].mxu0  ;;  %v9345_v8 = vpack.c.bf16 %v6403_v36, %v6402_v7 }
 0x319   :  { %v6405_v55 = vmax.f32 %v6341_v61, 0.0  ;;  %v9440_v50 = vadd.f32 %v9279_v10, %v12503_v14  ;;  %v6160_v27 = vpop.f32.mrb[53].mxu0 }
 0x31a   :  { %v6404_v9 = vmax.f32 %v6340_v32, 0.0  ;;  %v9441_v11 = vadd.f32 %v6160_v27, %v12506_v43  ;;  %9346 = vmatprep.subr.bf16.mxu1 %v9345_v8  ;;  %v6671_v27 = vld [vmem:[%s12676_s5 + $0x8] sm:$0xff] }
 0x31b   :  { %v6343_v46 = vadd.f32 %v9440_v50, %v12402_v19  ;;  %9348 = vmatpush3.bf16.msra.mxu1 %v12538_v25  ;;  %v6670_v50 = vld [vmem:[%s12676_s5] sm:$0xff] }
 0x31c   :  { %v6342_v20 = vadd.f32 %v9441_v11, %v12402_v19  ;;  %v9282_v31 = vpop.f32.mrb[54].mxu0  ;;  %v9349_v35 = vpack.c.bf16 %v6405_v55, %v6404_v9 }
 0x31d   :  { %v6407_v49 = vmax.f32 %v6343_v46, 0.0  ;;  %v9442_v37 = vadd.f32 %v9282_v31, %v12512_v22  ;;  %v6170_v1 = vpop.f32.mrb[55].mxu0  ;;  %v9381_v46 = vpack.c.bf16 %v6671_v27, %v6670_v50  ;;  %v6672_v31 = vld [vmem:[%s12676_s5 + $0x10] sm:$0xff] }
 0x31e   :  { %v6406_v40 = vmax.f32 %v6342_v20, 0.0  ;;  %v9443_v14 = vadd.f32 %v6170_v1, %v12515_v28  ;;  %9350 = vmatprep.subr.bf16.mxu1 %v9349_v35  ;;  %v6673_v35 = vld [vmem:[%s12676_s5 + $0x18] sm:$0xff]  ;;  %s9910_s5 = smov 32  }
 0x31f   :  { %v6345_v13 = vadd.f32 %v9442_v37, %v12402_v19  ;;  %9352 = vmatpush3.bf16.msra.mxu1 %v12554_v60  ;;  %v7746_v37 = vld [vmem:[%s12677_s4] ss:$0 sm:$0xff] }
 0x320   :  { %v6344_v43 = vadd.f32 %v9443_v14, %v12402_v19  ;;  %v9285_v15 = vpop.f32.mrb[56].mxu0  ;;  %v9353_v25 = vpack.c.bf16 %v6407_v49, %v6406_v40  ;;  %v9384_v49 = vpack.c.bf16 %v6673_v35, %v6672_v31 }
 0x321   :  { %v6409_v0 = vmax.f32 %v6345_v13, 0.0  ;;  %v9444_v44 = vadd.f32 %v9285_v15, %v12521_v63  ;;  %v6180_v54 = vpop.f32.mrb[57].mxu0  ;;  %v7748_v13 = vld [vmem:[%s12678_s6] ss:$0 sm:$0xff] }
 0x322   :  { %v6408_v59 = vmax.f32 %v6344_v43, 0.0  ;;  %v9445_v22 = vadd.f32 %v6180_v54, %v12524_v6  ;;  %9354 = vmatprep.subr.bf16.mxu1 %v9353_v25 }
 0x323   :  { %v6347_v29 = vadd.f32 %v9444_v44, %v12402_v19  ;;  %9356 = vmatpush3.bf16.msra.mxu1 %v12564_v21 }
 0x324   :  { %v6346_v28 = vadd.f32 %v9445_v22, %v12402_v19  ;;  %v9288_v3 = vpop.f32.mrb[58].mxu0  ;;  %v9357_v60 = vpack.c.bf16 %v6409_v0, %v6408_v59 }
 0x325   :  { %v6411_v48 = vmax.f32 %v6347_v29, 0.0  ;;  %v9446_v23 = vadd.f32 %v9288_v3, %v12530_v41  ;;  %v6190_v39 = vpop.f32.mrb[59].mxu0 }
 0x326   :  { %v6410_v30 = vmax.f32 %v6346_v28, 0.0  ;;  %v9447_v63 = vadd.f32 %v6190_v39, %v12533_v51  ;;  %9358 = vmatprep.subr.bf16.mxu1 %v9357_v60 }
 0x327   :  { %v6349_v34 = vadd.f32 %v9446_v23, %v12402_v19  ;;  %9360 = vmatpush3.bf16.msra.mxu1 %v12570_v26 }
 0x328   :  { %v6348_v6 = vadd.f32 %v9447_v63, %v12402_v19  ;;  %v9291_v2 = vpop.f32.mrb[60].mxu0  ;;  %v9361_v21 = vpack.c.bf16 %v6411_v48, %v6410_v30 }
 0x329   :  { %v6413_v33 = vmax.f32 %v6349_v34, 0.0  ;;  %v9448_v38 = vadd.f32 %v9291_v2, %v12541_v18  ;;  %v6200_v52 = vpop.f32.mrb[61].mxu0 }
 0x32a   :  { %v6412_v47 = vmax.f32 %v6348_v6, 0.0  ;;  %v9449_v41 = vadd.f32 %v6200_v52, %v12544_v42  ;;  %9362 = vmatprep.subr.bf16.mxu1 %v9361_v21 }
 0x32b   :  { %v6351_v17 = vadd.f32 %v9448_v38, %v12402_v19  ;;  %9364 = vmatpush3.bf16.msra.mxu1 %v12576_v57 }
 0x32c   :  { %v6350_v51 = vadd.f32 %v9449_v41, %v12402_v19  ;;  %v9294_v36 = vpop.f32.mrb[62].mxu0  ;;  %v9365_v26 = vpack.c.bf16 %v6413_v33, %v6412_v47 }
 0x32d   :  { %v6415_v5 = vmax.f32 %v6351_v17, 0.0  ;;  %v9450_v24 = vadd.f32 %v9294_v36, %v12557_v53  ;;  %v6210_v7 = vpop.f32.mrb[63].mxu0  ;;  %v6587_v53 = vld [vmem:[%s12674_s3] sm:$0xff] }
 0x32e   :  { %v6414_v58 = vmax.f32 %v6350_v51, 0.0  ;;  %v9451_v18 = vadd.f32 %v6210_v7, %v12560_v4  ;;  %9366 = vmatprep.subr.bf16.mxu1 %v9365_v26 }
 0x32f   :  { %v6353_v61 = vadd.f32 %v9450_v24, %v12402_v19  ;;  %9368 = vmatpush3.bf16.msra.mxu1 %v12582_v56  ;;  %v9907_v56 = vmov 0.0|0.0  }
 0x330   :  { %v6352_v42 = vadd.f32 %v9451_v18, %v12402_v19  ;;  %v9369_v32 = vpack.c.bf16 %v6415_v5, %v6414_v58  ;;  %v6588_v19 = vld [vmem:[%s12674_s3 + $0x8] sm:$0xff] }
 0x331   :  { %v6417_v57 = vmax.f32 %v6353_v61, 0.0  ;;  %v9378_v4 = vpack.c.bf16 %v6588_v19, %v6587_v53 }
 0x332   :  { %v6416_v10 = vmax.f32 %v6352_v42, 0.0  ;;  %9370 = vmatprep.subr.bf16.mxu1 %v9369_v32 }
 0x333   :  { %9372 = vmatpush3.bf16.msra.mxu1 %v12588_v62  ;;  %v9909_v62 = vmov 0.0  }
 0x334   :  { %v9373_v8 = vpack.c.bf16 %v6417_v57, %v6416_v10  ;;  %6755 = vst [vmem:[%s12675_s7] sm:$0x3] %v9909_v62 }
 0x336   :  { %9374 = vmatprep.subr.bf16.mxu1 %v9373_v8 }
 0x337   :  { %9376 = vmatpush3.bf16.msra.mxu1 %v12594_v16 }
 0x338   :  { %9377 = vmatprep.subr.bf16.mxu1 %v9907_v56 }
 0x33a   :  { %7745 = vmatmul.mubr.msk.f32.vlgmr.msra.gmra.mrb[66].mxu1 %vm12418_vm13, %v12804_v12 }
 0x33b   :  { %9379 = vmatpush3.bf16.msra.mxu1 %v9378_v4  ;;  %9299 = vmatprep.mubr.msk.f32.mxu1 %vm9908_vm14, %v9909_v62 }
 0x33c   :  { %9380 = vmatprep.subr.bf16.mxu1 %v9907_v56 }
 0x3cd   :  { %v8367_v45 = vpop.f32.mrb[64].mxu1 }
 0x3ce   :  { %v8368_v12 = vpop.f32.mrb[65].mxu1 }
 0x3cf   :  { %v8369_v16 = vadd.f32 %v8368_v12, %v8367_v45 }
 0x40d   :  { %v8402_v55 = vpop.f32.mrb[66].mxu1 }
 0x40e   :  { %v8403_v9 = vpop.f32.mrb[67].mxu1 }
 0x40f   :  { %v8404_v11 = vadd.f32 %v8403_v9, %v8402_v55 }
 0x411   :  { %v6584_v20 = vadd.f32 %v8404_v11, %v8369_v16 }
 0x413   :  { %9300 = vmatmul.mubr.msk.f32.vlgmr.msra.gmra.mrb[68].mxu1 %vm6596_vm15, %v6584_v20 }
 0x414   :  { %9382 = vmatpush3.bf16.msra.mxu1 %v9381_v46  ;;  %9310 = vmatprep.mubr.msk.f32.mxu1 %vm9908_vm14, %v9909_v62 }
 0x415   :  { %9383 = vmatprep.subr.bf16.mxu1 %v9907_v56 }
 0x418   :  { %9385 = vmatpush3.bf16.msra.mxu1 %v9384_v49 }
 0x4e6   :  { %v6666_v1 = vpop.f32.mrb[68].mxu1 }
 0x4e7   :  { %v6667_v40 = vadd.f32 %v7746_v37, %v6666_v1  ;;  %v9301_v14 = vpop.f32.mrb[69].mxu1 }
 0x4e9   :  { %9311 = vmatmul.mubr.msk.f32.vlgmr.msra.gmra.mrb[70].mxu1 %vm6681_vm0, %v6667_v40  ;;  %6757 = vst.msk [vmem:[%s12675_s7] sm:$0x3] %vm6756_vm1, %v6667_v40 }
 0x5bc   :  { %v6751_v43 = vpop.f32.mrb[70].mxu1 }
 0x5bd   :  { %v6752_v15 = vadd.f32 %v7748_v13, %v6751_v43  ;;  %v9312_v25 = vpop.f32.mrb[71].mxu1 }
 0x5bf   :  { %6759 = vrot.lane.b32.xlu0 %v6752_v15, %s9910_s5 }
 0x631   :  { %v6760_v0 = vpop.permute.xlu0 %6759 }
 0x632   :  { %6763 = vst.msk [vmem:[%s12675_s7] sm:$0x3] %vm6762_vm2, %v6760_v0 }

</bundles_post_ra>
